<compile_context>
chip_gen: v7x
topology: tpu7x:2x2x1
jax: 0.10.0
libtpu: 0.0.40
codegen_flags: <defaults>
</compile_context>

<pallas_src>
import jax
import jax.numpy as jnp
from jax.experimental import pallas as pl
from jax.experimental.pallas import tpu as pltpu


ADJ_DTYPE = jnp.int8     # {0,1} adjacency is exact in int8 -> 1 B/elem HBM stream
LANE = 128


def _round_up(a, b):
    return (a + b - 1) // b * b


def _vmem_capacity_bytes():
    """Physical VMEM per TensorCore (128 MiB on v5e/v6e, 64 MiB on v7x)."""
    try:
        return int(pltpu.get_tpu_info().vmem_capacity_bytes)
    except Exception:
        return 64 * 1024 * 1024          # conservative default (v7x per-TC)


def _fixed_vmem_bytes(tm, nfeat, nhid, slab_w):
    """TK-independent VMEM footprint (bytes); double-buffering counted."""
    f32 = 4
    x = 2 * tm * max(LANE, _round_up(nfeat, LANE)) * f32        # x row block
    tcol = 2 * tm * LANE * f32                                  # t row block (lane-padded)
    out = 2 * tm * slab_w * f32                                 # packed output slab
    aug = tm * LANE * f32                                       # (TM, 2) f32 accumulator
    w = (_round_up(nfeat, 8) * max(LANE, _round_up(nhid, LANE))
         + _round_up(nhid + 1, 8) * max(LANE, _round_up(2 * nhid + 1, LANE))
         + _round_up(2 * nhid, 8) * LANE
         + 3 * 8 * max(LANE, _round_up(2 * nhid + 1, LANE))) * f32 * 2
    slack = 4 * 1024 * 1024                                     # epilogue temporaries
    return x + tcol + out + aug + w + slack


def _plan_tiles(n, nfeat, nhid, slab_w):
    """Pick (TM, TK, vmem_limit) from the device's actual VMEM capacity."""
    cap = _vmem_capacity_bytes()
    vmem_limit = min(cap * 3 // 4, 112 * 1024 * 1024)

    # Row tile: as large as allowed (amortizes ~0.35 us/grid-step overhead),
    # multiple of 32 (covers int8/bf16 sublane packing), never exceeding N so
    # blocks stay in bounds.
    tm = n if n < 32 else min(1024, (n // 32) * 32)

    # Column tile: multiple of 128 lanes.  Everything left after the fixed
    # footprint goes to the int8 adj stream (2 buffers), its in-kernel bf16
    # widening (1 copy) and the streamed (TK, 2) bf16 [t|1] blocks (2 buffers).
    if n <= LANE:
        tk = n
    else:
        avail = max(0, vmem_limit - _fixed_vmem_bytes(tm, nfeat, nhid, slab_w))
        per_tk = 2 * tm * 1 + tm * 2 + 2 * LANE * 2
        tk_cap = max(LANE, (avail // per_tk) // LANE * LANE)
        tk = min((n // LANE) * LANE, tk_cap)
    return tm, tk, vmem_limit


def cfr_kernel(adj_ref, taug_ref, x_ref, t_ref,
               wgc_ref, bgc_ref, w1_ref, b1_ref, w2_ref, b2_ref,
               out_ref, aug_ref):
    k = pl.program_id(1)

    @pl.when(k == 0)
    def _():
        aug_ref[...] = jnp.zeros_like(aug_ref)

    # adj @ [t | 1]: column 0 = sum_j adj_ij * t_j, column 1 = row degree.
    # The int8 {0,1} chunk is widened to bf16 on-chip (free: kernel is HBM
    # bound) so the MXU runs its native bf16 path on every TPU generation.
    adj = adj_ref[...].astype(jnp.bfloat16)
    aug_ref[...] += jnp.dot(adj, taug_ref[...], preferred_element_type=jnp.float32)

    # Epilogue: all per-node heads, once per row tile, after the last adj chunk.
    @pl.when(k == pl.num_programs(1) - 1)
    def _():
        H = wgc_ref.shape[1]
        aug = aug_ref[...]
        # Degree-0 rows give inf/NaN exactly like the reference divide; padded /
        # out-of-range rows may be NaN but are sliced away by the wrapper.
        navg = aug[:, 0:1] * pl.reciprocal(aug[:, 1:2], approx=False)

        # rep = relu(gc[0](x))      (dropout is identity in eval mode)
        rep = jnp.maximum(
            jnp.dot(x_ref[...], wgc_ref[...], preferred_element_type=jnp.float32)
            + bgc_ref[...], 0.0)
        rep1 = jnp.concatenate([rep, navg], axis=1)                 # (TM, H+1)

        # Fused MXU pass: out_t00 | out_t10 | pp.  The navg row of the pp
        # column is zero, so pp sees only rep (rank-1 term folded into MXU).
        fused = (jnp.dot(rep1, w1_ref[...], preferred_element_type=jnp.float32)
                 + b1_ref[...])                                     # (TM, 2H+1)
        y_cat = jnp.maximum(fused[:, :2 * H], 0.0)                  # relu(y00|y10)
        p1 = jax.nn.sigmoid(fused[:, 2 * H:2 * H + 1])

        # Block-diagonal fusion of out_t01 / out_t11: one (2H, 2) matmul.
        logits = (jnp.dot(y_cat, w2_ref[...], preferred_element_type=jnp.float32)
                  + b2_ref[...])                                    # (TM, 2)
        y = jax.nn.sigmoid(jnp.where(t_ref[...] > 0,
                                     logits[:, 1:2], logits[:, 0:1]))

        # Single lane-dense full-width store: [rep | navg | p1 | y | 0-pad].
        pad = out_ref.shape[1] - (H + 3)
        parts = [rep1, p1, y]
        if pad:
            parts.append(jnp.zeros((rep1.shape[0], pad), jnp.float32))
        out_ref[...] = jnp.concatenate(parts, axis=1)


def prepare_adj(adj):
    """One-time cast of the {0,1} adjacency to the kernel's 1-byte streaming
    dtype.  Call this once, outside the hot path, and reuse the result so the
    O(N^2) matrix is never re-materialized per forward call."""
    return adj if adj.dtype == ADJ_DTYPE else adj.astype(ADJ_DTYPE)


def cfr_interference_forward(adj, x, t, params, *, tile_rows=None, tile_cols=None):
    N, nfeat = x.shape
    H = params["wgc"].shape[1]
    slab_w = max(LANE, _round_up(H + 3, LANE))

    tm, tk, vmem_limit = _plan_tiles(N, nfeat, H, slab_w)
    if tile_rows is not None:
        tm = tile_rows
    if tile_cols is not None:
        tk = tile_cols
    grid_m = pl.cdiv(N, tm)
    grid_k = pl.cdiv(N, tk)

    # No pad, no per-call cast of the O(N^2) adjacency (no-op if pre-quantized).
    adj = prepare_adj(adj)

    # O(N) / O(1) operand prep (negligible next to the adj stream).
    x = x.astype(jnp.float32)
    t_col = t.reshape(N, 1).astype(jnp.float32)
    # [t | 1] RHS for the adjacency matvec, zero-padded to whole TK blocks so
    # garbage adj columns in the last (partial) block multiply real zeros.
    t_aug = jnp.concatenate([t_col, jnp.ones_like(t_col)], axis=1).astype(jnp.bfloat16)
    t_aug = jnp.pad(t_aug, ((0, grid_k * tk - N), (0, 0)))

    # Trace-time weight packing (done once by XLA).
    w00, w10, wpp = params["w00"], params["w10"], params["wpp"]
    W1 = jnp.concatenate(
        [w00, w10, jnp.concatenate([wpp, jnp.zeros((1, 1), jnp.float32)], axis=0)],
        axis=1)                                                     # (H+1, 2H+1)
    b1 = jnp.concatenate([params["b00"], params["b10"], params["bpp"]], axis=1)
    W2 = jnp.zeros((2 * H, 2), jnp.float32)
    W2 = W2.at[:H, 0:1].set(params["w01"]).at[H:, 1:2].set(params["w11"])
    b2 = jnp.concatenate([params["b01"], params["b11"]], axis=1)

    def const_spec(arr):
        # Grid-invariant operands (tiny, << 0.2 MiB total): single-buffered.
        return pl.BlockSpec(arr.shape, lambda i, k: (0, 0),
                            pipeline_mode=pl.Buffered(1))

    in_specs = [
        pl.BlockSpec((tm, tk), lambda i, k: (i, k)),        # adj, int8 stream
        pl.BlockSpec((tk, 2), lambda i, k: (k, 0)),         # [t | 1] column block
        pl.BlockSpec((tm, nfeat), lambda i, k: (i, 0)),     # x row block
        pl.BlockSpec((tm, 1), lambda i, k: (i, 0)),         # t row block (for where)
        const_spec(params["wgc"]), const_spec(params["bgc"]),
        const_spec(W1), const_spec(b1),
        const_spec(W2), const_spec(b2),
    ]

    slab = pl.pallas_call(
        cfr_kernel,
        # Output rows rounded up to whole TM blocks (O(N) extra f32, never read
        # back) so every output store is a full, unmasked lane-dense block.
        out_shape=jax.ShapeDtypeStruct((grid_m * tm, slab_w), jnp.float32),
        grid=(grid_m, grid_k),
        in_specs=in_specs,
        out_specs=pl.BlockSpec((tm, slab_w), lambda i, k: (i, 0)),
        scratch_shapes=[pltpu.VMEM((tm, 2), jnp.float32)],
        compiler_params=pltpu.CompilerParams(
            # Row tiles are independent -> sharded across both TensorCores on
            # v7x; the adj-column axis is the (innermost) reduction axis.
            dimension_semantics=("parallel", "arbitrary"),
            vmem_limit_bytes=int(vmem_limit)),
    )(adj, t_aug, x, t_col,
      params["wgc"], params["bgc"], W1, b1, W2, b2)

    rep1 = slab[:N, :H + 1]
    navg = slab[:N, H]
    p1 = slab[:N, H + 1]
    y = slab[:N, H + 2]
    # Match PyTorch return signature: (p1, -1, y, rep1, neighborAverageT)
    return p1, -1, y, rep1, navg


# ----------------------------- test harness --------------------------------

def _init_linear(kw, kb, fan_in, fan_out):
    bound = 1.0 / float(fan_in) ** 0.5
    w = jax.random.uniform(kw, (fan_in, fan_out), jnp.float32, -bound, bound)
    b = jax.random.uniform(kb, (1, fan_out), jnp.float32, -bound, bound)
    return w, b


def _reference(adj, x, t, p):
    neighbors = jnp.sum(adj, axis=1)
    navg = (adj @ t) / neighbors
    rep = jax.nn.relu(x @ p["wgc"] + p["bgc"])
    rep1 = jnp.concatenate([rep, navg.reshape(-1, 1)], axis=1)
    y00 = jax.nn.relu(rep1 @ p["w00"] + p["b00"])
    y10 = jax.nn.relu(rep1 @ p["w10"] + p["b10"])
    y0 = jax.nn.sigmoid(y00 @ p["w01"] + p["b01"]).reshape(-1)
    y1 = jax.nn.sigmoid(y10 @ p["w11"] + p["b11"]).reshape(-1)
    y = jnp.where(t > 0, y1, y0)
    p1 = jax.nn.sigmoid(rep @ p["wpp"] + p["bpp"]).reshape(-1)
    return p1, y, rep1, navg


def _make_inputs(key, n, nfeat):
    k1, k2, k3 = jax.random.split(key, 3)
    adj = (jax.random.uniform(k1, (n, n)) > 0.5).astype(jnp.float32)
    adj = jnp.maximum(adj, jnp.eye(n, dtype=jnp.float32))   # self-loops: degree > 0
    x = jax.random.normal(k2, (n, nfeat), dtype=jnp.float32)
    t = (jax.random.uniform(k3, (n,)) > 0.5).astype(jnp.float32)
    return adj, x, t


def _check(adj, x, t, params, **tile_kw):
    adj_q = prepare_adj(adj)            # one-time streaming-dtype cast, reused
    p1, neg1, y, rep1, navg = cfr_interference_forward(adj_q, x, t, params, **tile_kw)
    jax.block_until_ready((p1, y, rep1, navg))
    rp1, ry, rrep1, rnavg = _reference(adj, x, t, params)
    assert neg1 == -1
    assert jnp.allclose(p1, rp1, atol=1e-5)
    assert jnp.allclose(y, ry, atol=1e-5)
    assert jnp.allclose(rep1, rrep1, atol=1e-5)
    assert jnp.allclose(navg, rnavg, atol=1e-5)


if __name__ == "__main__":
    NFEAT, NHID = 32, 32
    key = jax.random.PRNGKey(0)
    keys = jax.random.split(key, 14)

    # Deterministic synthetic parameters (PyTorch Linear-style uniform init).
    params = {}
    params["wgc"], params["bgc"] = _init_linear(keys[0], keys[1], NFEAT, NHID)
    params["w00"], params["b00"] = _init_linear(keys[2], keys[3], NHID + 1, NHID)
    params["w10"], params["b10"] = _init_linear(keys[4], keys[5], NHID + 1, NHID)
    params["w01"], params["b01"] = _init_linear(keys[6], keys[7], NHID, 1)
    params["w11"], params["b11"] = _init_linear(keys[8], keys[9], NHID, 1)
    params["wpp"], params["bpp"] = _init_linear(keys[10], keys[11], NHID, 1)

    # (a) aligned N, forced small tiles -> 3x3 grid exercises the k-axis
    #     accumulator and the multi-row-tile paths.
    adj, x, t = _make_inputs(keys[12], 384, NFEAT)
    _check(adj, x, t, params, tile_rows=128, tile_cols=128)

    # (b) unaligned N with the default (VMEM-budgeted) tiling -> partial edge
    #     blocks on both grid axes, with no padding of the O(N^2) adjacency.
    adj, x, t = _make_inputs(keys[13], 328, NFEAT)
    _check(adj, x, t, params)

    print("KERNEL_OK")
</pallas_src>

<mosaic_0001>
module attributes {stable_mosaic.version = 11 : i64} {
  func.func @cfr_kernel(%arg0: i32, %arg1: i32, %arg2: memref<128x128xi8, #tpu.memory_space<vmem>>, %arg3: memref<128x2xbf16, #tpu.memory_space<vmem>>, %arg4: memref<128x32xf32, #tpu.memory_space<vmem>>, %arg5: memref<128x1xf32, #tpu.memory_space<vmem>>, %arg6: memref<32x32xf32, #tpu.memory_space<vmem>>, %arg7: memref<1x32xf32, #tpu.memory_space<vmem>>, %arg8: memref<33x65xf32, #tpu.memory_space<vmem>>, %arg9: memref<1x65xf32, #tpu.memory_space<vmem>>, %arg10: memref<64x2xf32, #tpu.memory_space<vmem>>, %arg11: memref<1x2xf32, #tpu.memory_space<vmem>>, %arg12: memref<128x128xf32, #tpu.memory_space<vmem>>, %arg13: memref<128x2xf32, #tpu.memory_space<vmem>>) attributes {dimension_semantics = [#tpu.dimension_semantics<parallel>, #tpu.dimension_semantics<arbitrary>], iteration_bounds = array<i64: 3, 3>, scalar_prefetch = 0 : i64, scratch_operands = 1 : i64, tpu.core_type = #tpu.core_type<tc>, window_params = [{transform_indices = @transform_0, window_bounds = array<i64: 128, 128>}, {transform_indices = @transform_1, window_bounds = array<i64: 128, 2>}, {transform_indices = @transform_2, window_bounds = array<i64: 128, 32>}, {transform_indices = @transform_3, window_bounds = array<i64: 128, 1>}, {pipeline_mode = #tpu.pipeline_mode<synchronous>, transform_indices = @transform_4, window_bounds = array<i64: 32, 32>}, {pipeline_mode = #tpu.pipeline_mode<synchronous>, transform_indices = @transform_5, window_bounds = array<i64: 1, 32>}, {pipeline_mode = #tpu.pipeline_mode<synchronous>, transform_indices = @transform_6, window_bounds = array<i64: 33, 65>}, {pipeline_mode = #tpu.pipeline_mode<synchronous>, transform_indices = @transform_7, window_bounds = array<i64: 1, 65>}, {pipeline_mode = #tpu.pipeline_mode<synchronous>, transform_indices = @transform_8, window_bounds = array<i64: 64, 2>}, {pipeline_mode = #tpu.pipeline_mode<synchronous>, transform_indices = @transform_9, window_bounds = array<i64: 1, 2>}, {transform_indices = @transform_10, window_bounds = array<i64: 128, 128>}]} {
    %c0_i32 = arith.constant 0 : i32
    %0 = arith.cmpi eq, %arg1, %c0_i32 : i32
    %1 = arith.extui %0 : i1 to i32
    %c0_i32_0 = arith.constant 0 : i32
    %2 = arith.cmpi ne, %1, %c0_i32_0 : i32
    scf.if %2 {
      %cst_9 = arith.constant 0.000000e+00 : f32
      %13 = vector.broadcast %cst_9 : f32 to vector<128x2xf32>
      %c0_10 = arith.constant 0 : index
      %c0_11 = arith.constant 0 : index
      %14 = vector.load %arg13[%c0_10, %c0_11] : memref<128x2xf32, #tpu.memory_space<vmem>>, vector<128x2xf32>
      tpu.vector_store %arg13[%c0_10, %c0_11], %13 {strides = array<i32>} : memref<128x2xf32, #tpu.memory_space<vmem>>, vector<128x2xf32>,
    } else {
    }
    %c0 = arith.constant 0 : index
    %c0_1 = arith.constant 0 : index
    %3 = vector.load %arg2[%c0, %c0_1] : memref<128x128xi8, #tpu.memory_space<vmem>>, vector<128x128xi8>
    %4 = arith.sitofp %3 : vector<128x128xi8> to vector<128x128xbf16>
    %c0_2 = arith.constant 0 : index
    %c0_3 = arith.constant 0 : index
    %5 = vector.load %arg13[%c0_2, %c0_3] : memref<128x2xf32, #tpu.memory_space<vmem>>, vector<128x2xf32>
    %c0_4 = arith.constant 0 : index
    %c0_5 = arith.constant 0 : index
    %6 = vector.load %arg3[%c0_4, %c0_5] : memref<128x2xbf16, #tpu.memory_space<vmem>>, vector<128x2xbf16>
    %cst = arith.constant dense<0.000000e+00> : vector<128x2xf32>
    %7 = tpu.matmul %4, %6, %cst {dimension_numbers = #tpu.dot_dimension_numbers<[1], [0], [0], [1], [0, 0, 1, 1], [], []>} : vector<128x128xbf16>, vector<128x2xbf16>, vector<128x2xf32> -> vector<128x2xf32>
    %8 = arith.addf %5, %7 : vector<128x2xf32>
    %c0_6 = arith.constant 0 : index
    %c0_7 = arith.constant 0 : index
    %9 = vector.load %arg13[%c0_6, %c0_7] : memref<128x2xf32, #tpu.memory_space<vmem>>, vector<128x2xf32>
    tpu.vector_store %arg13[%c0_6, %c0_7], %8 {strides = array<i32>} : memref<128x2xf32, #tpu.memory_space<vmem>>, vector<128x2xf32>,
    %c2_i32 = arith.constant 2 : i32
    %10 = arith.cmpi eq, %arg1, %c2_i32 : i32
    %11 = arith.extui %10 : i1 to i32
    %c0_i32_8 = arith.constant 0 : i32
    %12 = arith.cmpi ne, %11, %c0_i32_8 : i32
    scf.if %12 {
      %c0_9 = arith.constant 0 : index
      %c0_10 = arith.constant 0 : index
      %13 = vector.load %arg13[%c0_9, %c0_10] : memref<128x2xf32, #tpu.memory_space<vmem>>, vector<128x2xf32>
      %14 = vector.extract_strided_slice %13 {offsets = [0, 0], sizes = [128, 1], strides = [1, 1]} : vector<128x2xf32> to vector<128x1xf32>
      %15 = vector.extract_strided_slice %13 {offsets = [0, 1], sizes = [128, 1], strides = [1, 1]} : vector<128x2xf32> to vector<128x1xf32>
      %16 = tpu.reciprocal %15 : vector<128x1xf32> -> vector<128x1xf32>
      %17 = arith.mulf %14, %16 : vector<128x1xf32>
      %c0_11 = arith.constant 0 : index
      %c0_12 = arith.constant 0 : index
      %18 = vector.load %arg4[%c0_11, %c0_12] : memref<128x32xf32, #tpu.memory_space<vmem>>, vector<128x32xf32>
      %c0_13 = arith.constant 0 : index
      %c0_14 = arith.constant 0 : index
      %19 = vector.load %arg6[%c0_13, %c0_14] : memref<32x32xf32, #tpu.memory_space<vmem>>, vector<32x32xf32>
      %cst_15 = arith.constant dense<0.000000e+00> : vector<128x32xf32>
      %20 = tpu.matmul %18, %19, %cst_15 {dimension_numbers = #tpu.dot_dimension_numbers<[1], [0], [0], [1], [0, 0, 1, 1], [], []>} : vector<128x32xf32>, vector<32x32xf32>, vector<128x32xf32> -> vector<128x32xf32>
      %c0_16 = arith.constant 0 : index
      %c0_17 = arith.constant 0 : index
      %21 = vector.load %arg7[%c0_16, %c0_17] : memref<1x32xf32, #tpu.memory_space<vmem>>, vector<1x32xf32>
      %22 = vector.broadcast %21 : vector<1x32xf32> to vector<128x32xf32>
      %23 = arith.addf %20, %22 : vector<128x32xf32>
      %cst_18 = arith.constant 0.000000e+00 : f32
      %24 = vector.broadcast %cst_18 : f32 to vector<128x32xf32>
      %25 = arith.maximumf %23, %24 : vector<128x32xf32>
      %26 = tpu.concatenate %25, %17 in 1 : vector<128x32xf32>, vector<128x1xf32> -> vector<128x33xf32>
      %c0_19 = arith.constant 0 : index
      %c0_20 = arith.constant 0 : index
      %27 = vector.load %arg8[%c0_19, %c0_20] : memref<33x65xf32, #tpu.memory_space<vmem>>, vector<33x65xf32>
      %cst_21 = arith.constant dense<0.000000e+00> : vector<128x65xf32>
      %28 = tpu.matmul %26, %27, %cst_21 {dimension_numbers = #tpu.dot_dimension_numbers<[1], [0], [0], [1], [0, 0, 1, 1], [], []>} : vector<128x33xf32>, vector<33x65xf32>, vector<128x65xf32> -> vector<128x65xf32>
      %c0_22 = arith.constant 0 : index
      %c0_23 = arith.constant 0 : index
      %29 = vector.load %arg9[%c0_22, %c0_23] : memref<1x65xf32, #tpu.memory_space<vmem>>, vector<1x65xf32>
      %30 = vector.broadcast %29 : vector<1x65xf32> to vector<128x65xf32>
      %31 = arith.addf %28, %30 : vector<128x65xf32>
      %32 = vector.extract_strided_slice %31 {offsets = [0, 0], sizes = [128, 64], strides = [1, 1]} : vector<128x65xf32> to vector<128x64xf32>
      %cst_24 = arith.constant 0.000000e+00 : f32
      %33 = vector.broadcast %cst_24 : f32 to vector<128x64xf32>
      %34 = arith.maximumf %32, %33 : vector<128x64xf32>
      %35 = vector.extract_strided_slice %31 {offsets = [0, 64], sizes = [128, 1], strides = [1, 1]} : vector<128x65xf32> to vector<128x1xf32>
      %36 = arith.negf %35 : vector<128x1xf32>
      %37 = math.exp %36 : vector<128x1xf32>
      %cst_25 = arith.constant 1.000000e+00 : f32
      %38 = vector.broadcast %cst_25 : f32 to vector<128x1xf32>
      %39 = arith.addf %38, %37 : vector<128x1xf32>
      %40 = arith.divf %38, %39 : vector<128x1xf32>
      %c0_26 = arith.constant 0 : index
      %c0_27 = arith.constant 0 : index
      %41 = vector.load %arg10[%c0_26, %c0_27] : memref<64x2xf32, #tpu.memory_space<vmem>>, vector<64x2xf32>
      %cst_28 = arith.constant dense<0.000000e+00> : vector<128x2xf32>
      %42 = tpu.matmul %34, %41, %cst_28 {dimension_numbers = #tpu.dot_dimension_numbers<[1], [0], [0], [1], [0, 0, 1, 1], [], []>} : vector<128x64xf32>, vector<64x2xf32>, vector<128x2xf32> -> vector<128x2xf32>
      %c0_29 = arith.constant 0 : index
      %c0_30 = arith.constant 0 : index
      %43 = vector.load %arg11[%c0_29, %c0_30] : memref<1x2xf32, #tpu.memory_space<vmem>>, vector<1x2xf32>
      %44 = vector.broadcast %43 : vector<1x2xf32> to vector<128x2xf32>
      %45 = arith.addf %42, %44 : vector<128x2xf32>
      %c0_31 = arith.constant 0 : index
      %c0_32 = arith.constant 0 : index
      %46 = vector.load %arg5[%c0_31, %c0_32] : memref<128x1xf32, #tpu.memory_space<vmem>>, vector<128x1xf32>
      %cst_33 = arith.constant 0.000000e+00 : f32
      %47 = vector.broadcast %cst_33 : f32 to vector<128x1xf32>
      %48 = arith.cmpf ogt, %46, %47 : vector<128x1xf32>
      %49 = vector.extract_strided_slice %45 {offsets = [0, 1], sizes = [128, 1], strides = [1, 1]} : vector<128x2xf32> to vector<128x1xf32>
      %50 = vector.extract_strided_slice %45 {offsets = [0, 0], sizes = [128, 1], strides = [1, 1]} : vector<128x2xf32> to vector<128x1xf32>
      %51 = arith.select %48, %49, %50 : vector<128x1xi1>, vector<128x1xf32>
      %52 = arith.negf %51 : vector<128x1xf32>
      %53 = math.exp %52 : vector<128x1xf32>
      %cst_34 = arith.constant 1.000000e+00 : f32
      %54 = vector.broadcast %cst_34 : f32 to vector<128x1xf32>
      %55 = arith.addf %54, %53 : vector<128x1xf32>
      %56 = arith.divf %54, %55 : vector<128x1xf32>
      %cst_35 = arith.constant 0.000000e+00 : f32
      %57 = vector.broadcast %cst_35 : f32 to vector<128x93xf32>
      %58 = tpu.concatenate %26, %40, %56, %57 in 1 : vector<128x33xf32>, vector<128x1xf32>, vector<128x1xf32>, vector<128x93xf32> -> vector<128x128xf32>
      %c0_36 = arith.constant 0 : index
      %c0_37 = arith.constant 0 : index
      %59 = vector.load %arg12[%c0_36, %c0_37] : memref<128x128xf32, #tpu.memory_space<vmem>>, vector<128x128xf32>
      tpu.vector_store %arg12[%c0_36, %c0_37], %58 {strides = array<i32>} : memref<128x128xf32, #tpu.memory_space<vmem>>, vector<128x128xf32>,
    } else {
    }
    return
  }
  func.func @transform_0(%arg0: i32, %arg1: i32) -> (i32, i32) {
    %c0_i32 = arith.constant 0 : i32
    return %arg0, %arg1 : i32, i32
  }
  func.func @transform_1(%arg0: i32, %arg1: i32) -> (i32, i32) {
    %c0_i32 = arith.constant 0 : i32
    %c0_i32_0 = arith.constant 0 : i32
    return %arg1, %c0_i32 : i32, i32
  }
  func.func @transform_2(%arg0: i32, %arg1: i32) -> (i32, i32) {
    %c0_i32 = arith.constant 0 : i32
    %c0_i32_0 = arith.constant 0 : i32
    return %arg0, %c0_i32 : i32, i32
  }
  func.func @transform_3(%arg0: i32, %arg1: i32) -> (i32, i32) {
    %c0_i32 = arith.constant 0 : i32
    %c0_i32_0 = arith.constant 0 : i32
    return %arg0, %c0_i32 : i32, i32
  }
  func.func @transform_4(%arg0: i32, %arg1: i32) -> (i32, i32) {
    %c0_i32 = arith.constant 0 : i32
    %c0_i32_0 = arith.constant 0 : i32
    %c0_i32_1 = arith.constant 0 : i32
    return %c0_i32, %c0_i32_0 : i32, i32
  }
  func.func @transform_5(%arg0: i32, %arg1: i32) -> (i32, i32) {
    %c0_i32 = arith.constant 0 : i32
    %c0_i32_0 = arith.constant 0 : i32
    %c0_i32_1 = arith.constant 0 : i32
    return %c0_i32, %c0_i32_0 : i32, i32
  }
  func.func @transform_6(%arg0: i32, %arg1: i32) -> (i32, i32) {
    %c0_i32 = arith.constant 0 : i32
    %c0_i32_0 = arith.constant 0 : i32
    %c0_i32_1 = arith.constant 0 : i32
    return %c0_i32, %c0_i32_0 : i32, i32
  }
  func.func @transform_7(%arg0: i32, %arg1: i32) -> (i32, i32) {
    %c0_i32 = arith.constant 0 : i32
    %c0_i32_0 = arith.constant 0 : i32
    %c0_i32_1 = arith.constant 0 : i32
    return %c0_i32, %c0_i32_0 : i32, i32
  }
  func.func @transform_8(%arg0: i32, %arg1: i32) -> (i32, i32) {
    %c0_i32 = arith.constant 0 : i32
    %c0_i32_0 = arith.constant 0 : i32
    %c0_i32_1 = arith.constant 0 : i32
    return %c0_i32, %c0_i32_0 : i32, i32
  }
  func.func @transform_9(%arg0: i32, %arg1: i32) -> (i32, i32) {
    %c0_i32 = arith.constant 0 : i32
    %c0_i32_0 = arith.constant 0 : i32
    %c0_i32_1 = arith.constant 0 : i32
    return %c0_i32, %c0_i32_0 : i32, i32
  }
  func.func @transform_10(%arg0: i32, %arg1: i32) -> (i32, i32) {
    %c0_i32 = arith.constant 0 : i32
    %c0_i32_0 = arith.constant 0 : i32
    return %arg0, %c0_i32 : i32, i32
  }
}

</mosaic_0001>

<bundles_post_ra>
// kernel: tpu_custom_call.1
= control target key start
LH: loop header
LB: loop body
LE: loop exit
PB: predicated region body
PF: predicated region fallthrough
CT: control target
= control target key end

     0   :  { %s3907_s0 = inlined_call_operand.vmem [shape: s8[384,384], index: 0, kind: input, shape index: {}]   ;;  %s3908_s1 = inlined_call_operand.vmem [shape: bf16[384,2], index: 1, kind: input, shape index: {}]   ;;  %s3909_s2 = inlined_call_operand.vmem [shape: f32[384,32], index: 2, kind: input, shape index: {}]   ;;  %s3910_s3 = inlined_call_operand.vmem [shape: f32[384,1], index: 3, kind: input, shape index: {}]   ;;  %s3911_s4 = inlined_call_operand.vmem [shape: f32[32,32], index: 4, kind: input, shape index: {}]   ;;  %s3912_s5 = inlined_call_operand.vmem [shape: f32[1,32], index: 5, kind: input, shape index: {}]   ;;  %s3913_s6 = inlined_call_operand.vmem [shape: f32[33,65], index: 6, kind: input, shape index: {}]   ;;  %s3914_s7 = inlined_call_operand.vmem [shape: f32[1,65], index: 7, kind: input, shape index: {}]   ;;  %s3915_s8 = inlined_call_operand.vmem [shape: f32[64,2], index: 8, kind: input, shape index: {}]   ;;  %s3916_s9 = inlined_call_operand.vmem [shape: f32[1,2], index: 9, kind: input, shape index: {}]   ;;  %s3917_s10 = inlined_call_operand.hbm [shape: f32[384,128], index: 10, kind: output, shape index: {}]  }
   0x1   :  { %3927 = sst [smem:[#allocation16_spill]] %s3907_s0 }
   0x2   :  { %3928 = sst [smem:[#allocation17_spill]] %s3916_s9 }
   0x3   :  { %3929 = sst [smem:[#allocation18_spill]] %s3917_s10 }
   0x4   :  { %15 = vsyncpa [#allocation5], 0 }
   0x5   :  { %17 = vsyncpa [#allocation5 + $0x1], 0  ;;  %s3056_s13 = smov 0   ;;  %s3058_s14 = smov 0  }
   0x6   :  { %s3060_s15 = smov 0   ;;  %s3062_s16 = smov 0  }
   0x7   :  { %s3064_s17 = smov 0   ;;  %s3066_s18 = smov 0  }
   0x8   :  { %s3068_s19 = smov 0   ;;  %s3070_s20 = smov 0  }
   0x9   :  { %s3072_s21 = smov 0   ;;  %s3074_s22 = smov 0  }
   0xa LB: > { %3930 = sst [smem:[#allocation7_spill]] %s2955_s13  ;;  %s2230_s23 = sadd.s32 4294967295, %s2991_s22   ;;  %s2991_s22 = sphi %s3074_s22, %s23_s22   ;;  %s2987_s21 = sphi %s3072_s21, %s3954_s21   ;;  %s2983_s20 = sphi %s3070_s20, %s3953_s20   ;;  %s2979_s19 = sphi %s3068_s19, %s3958_s19   ;;  %s2975_s18 = sphi %s3066_s18, %s3951_s18   ;;  %s2971_s17 = sphi %s3064_s17, %s3950_s17   ;;  %s2967_s16 = sphi %s3062_s16, %s3949_s16   ;;  %s2963_s15 = sphi %s3060_s15, %s3957_s15   ;;  %s2959_s14 = sphi %s3058_s14, %s3956_s14   ;;  %s2955_s13 = sphi %s3056_s13, %s3955_s13  }
   0xb   : > { %3931 = sst [smem:[#allocation8_spill]] %s2971_s17  ;;  %s2231_s24 = sadd.s32 4294967294, %s2991_s22  }
   0xc   : > { %3932 = sst [smem:[#allocation9_spill]] %s2983_s20  ;;  %s32_s25 = sadd.s32 1, %s2983_s20 }
   0xd   : > { %3933 = sst [smem:[#allocation10_spill]] %s2987_s21  ;;  %s35_s26 = sadd.s32 1, %s2987_s21 }
   0xe   : > { %p33_p0 = scmp.ge.s32.totalorder %s32_s25, 3  ;;  %s44_s27 = sadd.s32 1, %s2971_s17 }
   0xf   : > { %p51_p1 = scmp.ne.s32.totalorder %s2971_s17, %s2967_s16  ;;  %p52_p2 = scmp.eq.s32.totalorder %s2991_s22, 0 }
  0x10   : > { %s3960_s25 = smov (%p33_p0, %s32_s25), 0  ;;  %s3962_s26 = smov (!%p33_p0, %s35_s26), %s2987_s21 }
  0x11   : > { %3934 = sst [smem:[#allocation11_spill]] %s3960_s25  ;;  %s40_s28 = ssub.s32 %s2983_s20, %s3960_s25 }
  0x12   : > { %p3119_p3 = por %p52_p2, %p51_p1  ;;  %p37_p4 = scmp.ge.s32.totalorder %s3962_s26, 3 }
  0x13   : > { %s274_s30 = sadd.s32 1, %s2963_s15  ;;  %p284_p5 = scmp.ne.s32.totalorder %s2963_s15, %s2959_s14 }
  0x14   : > { %p285_p6 = scmp.eq.s32.totalorder %s2230_s23, 8  ;;  %s3964_s26 = smov (%p37_p4, %s3962_s26), 0 }
  0x15   : > { %3936 = sst [smem:[#allocation12_spill]] %s3964_s26  ;;  %p290_p8 = scmp.ne.s32.totalorder %s2959_s14, %s2955_s13 }
  0x16   : > { %p3128_p7 = por %p285_p6, %p284_p5  ;;  %s39_s12 = ssub.s32 %s2987_s21, %s3964_s26 }
  0x17   : > { %p291_p9 = scmp.eq.s32.totalorder %s2231_s24, 8  ;;  %s41_s25 = sor.u32 %s40_s28, %s39_s12 }
  0x18   : > { %p272_p10 = scmp.eq.s32.totalorder %s39_s12, 0  ;;  %p42_p11 = scmp.eq.s32.totalorder %s41_s25, 0 }
  0x19   : > { %p3136_p12 = por %p291_p9, %p290_p8  ;;  %p2233_p13 = scmp.ge.s32.totalorder %s2991_s22, 9 }
  0x1a   : > { %s3141_s9 = scalar_select %p272_p10, %s2963_s15, %s274_s30  }
  0x1b   : > { %s3938_s10 = scalar_select %p3136_p12, 1, 0 }
  0x1c   : > { %3940 = sst [smem:[#allocation14_spill]] %s3141_s9  ;;  %325 = sbr.rel (%p2233_p13) target bundleno = 47 (0x2f), region = 40 }
  0x1d   : > { %3939 = sst [smem:[#allocation13_spill]] %s3938_s10 }
  0x1e   : > { %s3144_s23 = scalar_select %p42_p11, %s2971_s17, %s44_s27  }
  0x20   : > { %3941 = sst [smem:[#allocation15_spill]] %s3144_s23 }
  0x23   : > { %328 = sbr.rel (!%p3119_p3) target bundleno = 47 (0x2f), region = 44  ;;  %s330_s24 = sand.u32 (%p3119_p3), 1, %s2971_s17  }
  0x24   : > { %s2618_s28 = smul.u32 (%p3119_p3), 12, %s2987_s21  ;;  %s2234_s25 = sshll.u32 (%p3119_p3), %s330_s24, 5 }
  0x25   : > { %s3942_s0 = sld [smem:[#allocation16_spill]] (%p3119_p3)  ;;  %s332_s27 = scalar_lea.vmem (%p3119_p3), [#allocation3], %s2234_s25 }
  0x26   : > { %s335_s12 = sadd.s32 (%p3119_p3), %s2983_s20, %s2618_s28 }
  0x27   : > { %s2237_s26 = sshll.u32 (%p3119_p3), %s335_s12, 3 }
  0x2b   : > { %s337_s30 = scalar_lea.vmem %s3942_s0, %s2237_s26 }
  0x2c   : > { %v371_v0 = vld [vmem:[%s337_s30] sm:$0xff]  ;;  %v373_v1 = vld [vmem:[%s337_s30 + $0x18] sm:$0xff]  ;;  %v375_v2 = vld [vmem:[%s337_s30 + $0x30] sm:$0xff] }
  0x2d   : > { %372 = vst [vmem:[%s332_s27] sm:$0xff] %v371_v0  ;;  %374 = vst [vmem:[%s332_s27 + $0x8] sm:$0xff] %v373_v1  ;;  %v377_v3 = vld [vmem:[%s337_s30 + $0x48] sm:$0xff] }
  0x2e   : > { %376 = vst [vmem:[%s332_s27 + $0x10] sm:$0xff] %v375_v2  ;;  %378 = vst [vmem:[%s332_s27 + $0x18] sm:$0xff] %v377_v3 }
  0x2f PF: > { %p2238_p0 = scmp.ge.s32.totalorder %s2991_s22, 1  ;;  %p410_p1 = scmp.lt.s32.totalorder %s2991_s22, 10 }
  0x31   : > { %p411_p2 = pnand %p2238_p0, %p410_p1 }
  0x32   : > { %s417_s10 = sand.u32 (!%p411_p2), 1, %s2967_s16   ;;  %s3925_s13 = sand.u32 (!%p411_p2), 1, %s2959_s14  }
  0x33   : > { %414 = sbr.rel (%p411_p2) target bundleno = 1322 (0x52a), region = 94  ;;  %s2239_s26 = sshll.u32 (!%p411_p2), %s417_s10, 5 }
  0x34   : > { %s2240_s29 = sshll.u32 (!%p411_p2), %s3925_s13, 7  ;;  %s2241_s24 = sshll.u32 (!%p411_p2), %s2975_s18, 4 }
  0x35   : > { %s2243_s28 = sshll.u32 (!%p411_p2), %s2979_s19, 4  ;;  %p471_p3 = scmp.lt.s32.totalorder (!%p411_p2), %s2241_s24, 47 }
  0x36   : > { %p477_p4 = scmp.lt.s32.totalorder (!%p411_p2), %s2243_s28, 47  ;;  %s3178_s17 = scalar_lea.vmem (!%p411_p2), [#allocation3], %s2239_s26 }
  0x37   : > { %s3180_s9 = scalar_lea.vmem (!%p411_p2), [#allocation4], %s2240_s29  ;;  %p2247_p5 = scmp.ne.s32.totalorder (!%p411_p2), %s2975_s18, 0 }
  0x3a   : > { %s3966_s24 = smov (!%p471_p3, %s2241_s24), 47  ;;  %s3968_s28 = smov (!%p477_p4, %s2243_s28), 47 }
  0x3b   : > { %s2242_s25 = sshll.u32 %s3966_s24, 2  ;;  %s2244_s0 = sshll.u32 %s3968_s28, 3  ;;  %vm494_vm0 = vcmask (!%p2247_p5), 15360   ;;  %v2993_v4 = vmov (!%p2247_p5), 0.0  }
  0x3c   : > { %s3166_s27 = scalar_lea.vmem %s3908_s1, %s2242_s25  ;;  %s3171_s16 = scalar_lea.vmem %s3909_s2, %s2244_s0  ;;  %495 = vst.msk [vmem:[#allocation2] sm:$0xff] (!%p2247_p5), %vm494_vm0, %v2993_v4  ;;  %496 = vst.msk [vmem:[#allocation2 + $0x8] sm:$0xff] (!%p2247_p5), %vm494_vm0, %v2993_v4 }
  0x3d   : > { %s3176_s23 = scalar_lea.vmem %s3910_s3, %s2244_s0  ;;  %493 = sbr.rel (%p2247_p5) target bundleno = 68 (0x44), region = 102  ;;  %497 = vst.msk [vmem:[#allocation2 + $0x10] sm:$0xff] (!%p2247_p5), %vm494_vm0, %v2993_v4  ;;  %498 = vst.msk [vmem:[#allocation2 + $0x18] sm:$0xff] (!%p2247_p5), %vm494_vm0, %v2993_v4 }
  0x3e   : > { %499 = vst.msk [vmem:[#allocation2 + $0x20] sm:$0xff] (!%p2247_p5), %vm494_vm0, %v2993_v4  ;;  %500 = vst.msk [vmem:[#allocation2 + $0x28] sm:$0xff] (!%p2247_p5), %vm494_vm0, %v2993_v4 }
  0x3f   : > { %501 = vst.msk [vmem:[#allocation2 + $0x30] sm:$0xff] (!%p2247_p5), %vm494_vm0, %v2993_v4  ;;  %502 = vst.msk [vmem:[#allocation2 + $0x38] sm:$0xff] (!%p2247_p5), %vm494_vm0, %v2993_v4 }
  0x40   : > { %503 = vst.msk [vmem:[#allocation2 + $0x40] sm:$0xff] (!%p2247_p5), %vm494_vm0, %v2993_v4  ;;  %504 = vst.msk [vmem:[#allocation2 + $0x48] sm:$0xff] (!%p2247_p5), %vm494_vm0, %v2993_v4 }
  0x41   : > { %505 = vst.msk [vmem:[#allocation2 + $0x50] sm:$0xff] (!%p2247_p5), %vm494_vm0, %v2993_v4  ;;  %506 = vst.msk [vmem:[#allocation2 + $0x58] sm:$0xff] (!%p2247_p5), %vm494_vm0, %v2993_v4 }
  0x42   : > { %507 = vst.msk [vmem:[#allocation2 + $0x60] sm:$0xff] (!%p2247_p5), %vm494_vm0, %v2993_v4  ;;  %508 = vst.msk [vmem:[#allocation2 + $0x68] sm:$0xff] (!%p2247_p5), %vm494_vm0, %v2993_v4 }
  0x43   : > { %509 = vst.msk [vmem:[#allocation2 + $0x70] sm:$0xff] (!%p2247_p5), %vm494_vm0, %v2993_v4  ;;  %510 = vst.msk [vmem:[#allocation2 + $0x78] sm:$0xff] (!%p2247_p5), %vm494_vm0, %v2993_v4 }
  0x44 PF: > { %v2713_v5 = vld [vmem:[%s3166_s27] sm:$0xff]   ;;  %v2714_v6 = vld [vmem:[%s3166_s27 + $0x8] sm:$0xff]   ;;  %v2715_v7 = vld [vmem:[%s3166_s27 + $0x10] sm:$0xff]   ;;  %vm716_vm1 = vcmask 15360   ;;  %p2256_p6 = scmp.ne.s32.totalorder %s2975_s18, 2 }
  0x45   : > { %2428 = vmatprep.subr.bf16.mxu0 %v2713_v5  ;;  %2598 = vmatprep.subr.bf16.mxu1 %v2713_v5  ;;  %v2716_v8 = vld [vmem:[%s3166_s27 + $0x18] sm:$0xff]   ;;  %v511_v9 = vld [vmem:[%s3178_s17] sm:$0xff]  ;;  %v513_v10 = vld [vmem:[%s3178_s17 + $0x10] sm:$0xff]  ;;  %vm876_vm2 = vcmask (!%p2256_p6), 261120   ;;  %s2994_s24 = smov (!%p2256_p6), 127   ;;  %vm1227_vm3 = vcmask (!%p2256_p6), 1040384  }
  0x46   : > { %2429 = vmatpush3.bf16.msra.mxu0 %v2713_v5  ;;  %2606 = vmatpush3.bf16.msra.mxu1 %v2713_v5  ;;  %v515_v11 = vunpack.c.l.s8.bf16 %v511_v9  ;;  %v519_v12 = vunpack.c.l.s8.bf16 %v513_v10  ;;  %v2717_v13 = vld [vmem:[%s3166_s27 + $0x20] sm:$0xff]   ;;  %v2718_v14 = vld [vmem:[%s3166_s27 + $0x28] sm:$0xff]   ;;  %v2719_v15 = vld [vmem:[%s3166_s27 + $0x30] sm:$0xff]   ;;  %v516_v19 = vunpack.c.h.s8.bf16 %v511_v9  ;;  %v520_v20 = vunpack.c.h.s8.bf16 %v513_v10  ;;  %s2995_s21 = smov (!%p2256_p6), 32   ;;  %s3943_s30 = sld [smem:[#allocation17_spill]] (!%p2256_p6) }
  0x47   : > { %2430 = vmatprep.subr.bf16.mxu0 %v2714_v6  ;;  %2599 = vmatprep.subr.bf16.mxu1 %v2714_v6  ;;  %v2720_v16 = vld [vmem:[%s3166_s27 + $0x38] sm:$0xff]   ;;  %v512_v17 = vld [vmem:[%s3178_s17 + $0x8] sm:$0xff]  ;;  %v525_v25 = vld [vmem:[#allocation2 + $0x10] sm:$0xff]  ;;  %vm1178_vm4 = vcmask (!%p2256_p6), 269312   ;;  %vm1503_vm5 = vcmask (!%p2256_p6), 523264   ;;  %s2996_s27 = smov (!%p2256_p6), 97  }
  0x48   : > { %2444 = vmatprep.mubr.bf16.mxu0 %v515_v11  ;;  %2452 = vmatprep.mubr.bf16.mxu1 %v519_v12  ;;  %v514_v18 = vld [vmem:[%s3178_s17 + $0x18] sm:$0xff]  ;;  %v517_v21 = vunpack.c.l.s8.bf16 %v512_v17  ;;  %v518_v23 = vunpack.c.h.s8.bf16 %v512_v17  ;;  %v533_v26 = vld [vmem:[#allocation2 + $0x50] sm:$0xff]  ;;  %v523_v27 = vld [vmem:[#allocation2] sm:$0xff] }
  0x49   : > { %v521_v22 = vunpack.c.l.s8.bf16 %v514_v18  ;;  %v522_v24 = vunpack.c.h.s8.bf16 %v514_v18  ;;  %v531_v28 = vld [vmem:[#allocation2 + $0x40] sm:$0xff]  ;;  %v526_v31 = vld [vmem:[#allocation2 + $0x18] sm:$0xff]  ;;  %v524_v37 = vld [vmem:[#allocation2 + $0x8] sm:$0xff] }
  0x4a   : > { %2431 = vmatpush3.bf16.msra.mxu0 %v2714_v6  ;;  %2607 = vmatpush3.bf16.msra.mxu1 %v2714_v6  ;;  %v534_v32 = vld [vmem:[#allocation2 + $0x58] sm:$0xff]  ;;  %v532_v38 = vld [vmem:[#allocation2 + $0x48] sm:$0xff]  ;;  %v529_v49 = vld [vmem:[#allocation2 + $0x30] sm:$0xff] }
  0x4b   : > { %2432 = vmatprep.subr.bf16.mxu0 %v2715_v7  ;;  %2600 = vmatprep.subr.bf16.mxu1 %v2715_v7  ;;  %v537_v50 = vld [vmem:[#allocation2 + $0x70] sm:$0xff]  ;;  %v527_v51 = vld [vmem:[#allocation2 + $0x20] sm:$0xff]  ;;  %v530_v55 = vld [vmem:[#allocation2 + $0x38] sm:$0xff] }
  0x4c   : > { %v535_v52 = vld [vmem:[#allocation2 + $0x60] sm:$0xff]  ;;  %v538_v56 = vld [vmem:[#allocation2 + $0x78] sm:$0xff]  ;;  %v528_v61 = vld [vmem:[#allocation2 + $0x28] sm:$0xff] }
  0x4d   : > { %v536_v62 = vld [vmem:[#allocation2 + $0x68] sm:$0xff]  ;;  %v865_v12 = vld [vmem:[%s3911_s4] sm:$0xff] (!%p2256_p6)  ;;  %v868_v17 = vld [vmem:[%s3911_s4 + $0x18] sm:$0xff] (!%p2256_p6) }
  0x4e   : > { %2433 = vmatpush3.bf16.msra.mxu0 %v2715_v7  ;;  %2608 = vmatpush3.bf16.msra.mxu1 %v2715_v7 }
  0x4f   : > { %2434 = vmatprep.subr.bf16.mxu0 %v2716_v8  ;;  %2601 = vmatprep.subr.bf16.mxu1 %v2716_v8 }
  0x52   : > { %2435 = vmatpush3.bf16.msra.mxu0 %v2716_v8  ;;  %2609 = vmatpush3.bf16.msra.mxu1 %v2716_v8 }
  0x53   : > { %2436 = vmatprep.subr.bf16.mxu0 %v2717_v13  ;;  %2602 = vmatprep.subr.bf16.mxu1 %v2717_v13 }
  0x56   : > { %2437 = vmatpush3.bf16.msra.mxu0 %v2717_v13  ;;  %2610 = vmatpush3.bf16.msra.mxu1 %v2717_v13  ;;  %v866_v13 = vld [vmem:[%s3911_s4 + $0x8] sm:$0xff] (!%p2256_p6) }
  0x57   : > { %2438 = vmatprep.subr.bf16.mxu0 %v2718_v14  ;;  %2603 = vmatprep.subr.bf16.mxu1 %v2718_v14 }
  0x5a   : > { %2439 = vmatpush3.bf16.msra.mxu0 %v2718_v14  ;;  %2611 = vmatpush3.bf16.msra.mxu1 %v2718_v14 }
  0x5b   : > { %2440 = vmatprep.subr.bf16.mxu0 %v2719_v15  ;;  %2604 = vmatprep.subr.bf16.mxu1 %v2719_v15 }
  0x5e   : > { %2441 = vmatpush3.bf16.msra.mxu0 %v2719_v15  ;;  %2612 = vmatpush3.bf16.msra.mxu1 %v2719_v15  ;;  %v2566_v15 = vpack.c.bf16 (!%p2256_p6), %v866_v13, %v865_v12 }
  0x5f   : > { %2442 = vmatprep.subr.bf16.mxu0 %v2720_v16  ;;  %2605 = vmatprep.subr.bf16.mxu1 %v2720_v16 }
  0x62   : > { %2443 = vmatpush3.bf16.msra.mxu0 %v2720_v16  ;;  %2613 = vmatpush3.bf16.msra.mxu1 %v2720_v16  ;;  %v867_v16 = vld [vmem:[%s3911_s4 + $0x10] sm:$0xff] (!%p2256_p6) }
  0x63   : > { %v2570_v18 = vpack.c.bf16 (!%p2256_p6), %v868_v17, %v867_v16  ;;  %2567 = vmatprep.subr.bf16.mxu0 (!%p2256_p6), %v2566_v15  ;;  %2614 = vmatprep.subr.bf16.mxu1 (!%p2256_p6), %v2566_v15 }
  0x65   : > { %2445 = vmatmul.mubr.bf16.vlgmr.msra.gmra.mrb[0].mxu0 %v516_v19  ;;  %2453 = vmatmul.mubr.bf16.vlgmr.msra.gmra.mrb[0].mxu1 %v520_v20  ;;  %v849_v19 = vld [vmem:[%s3171_s16] sm:$0xff] (!%p2256_p6) }
  0x66   : > { %2448 = vmatprep.mubr.bf16.mxu0 %v517_v21  ;;  %2456 = vmatprep.mubr.bf16.mxu1 %v521_v22 }
  0x67   : > { %2569 = vmatpush3.bf16.msra.mxu0 (!%p2256_p6), %v2566_v15  ;;  %2616 = vmatpush3.bf16.msra.mxu1 (!%p2256_p6), %v2566_v15 }
  0x68   : > { %2571 = vmatprep.subr.bf16.mxu0 (!%p2256_p6), %v2570_v18  ;;  %2615 = vmatprep.subr.bf16.mxu1 (!%p2256_p6), %v2570_v18 }
  0x6b   : > { %2573 = vmatpush3.bf16.msra.mxu0 (!%p2256_p6), %v2570_v18  ;;  %2617 = vmatpush3.bf16.msra.mxu1 (!%p2256_p6), %v2570_v18 }
  0x6d   : > { %2449 = vmatmul.mubr.bf16.gmra.mrb[4].mxu0 %v518_v23  ;;  %2457 = vmatmul.mubr.bf16.gmra.mrb[4].mxu1 %v522_v24  ;;  %v850_v23 = vld [vmem:[%s3171_s16 + $0x8] sm:$0xff] (!%p2256_p6) }
  0x6e   : > { %2468 = vmatprep.mubr.msk.f32.mxu0 (!%p2256_p6), %vm876_vm2, %v849_v19 }
 0x138   : > { %v2446_v29 = vpop.f32.mrb[0].mxu0  ;;  %v2454_v30 = vpop.f32.mrb[0].mxu1 }
 0x139   : > { %v702_v33 = vadd.f32 %v2446_v29, %v525_v25  ;;  %v710_v34 = vadd.f32 %v2454_v30, %v533_v26  ;;  %v637_v35 = vpop.f32.mrb[1].mxu0  ;;  %v669_v36 = vpop.f32.mrb[1].mxu1  ;;  %v857_v25 = vld [vmem:[%s3171_s16 + $0x40] sm:$0xff] (!%p2256_p6)  ;;  %v851_v26 = vld [vmem:[%s3171_s16 + $0x10] sm:$0xff] (!%p2256_p6)  ;;  %2469 = vmatmul.mubr.msk.f32.vlgmr.msra.gmra.mrb[0].mxu0 (!%p2256_p6), %vm876_vm2, %v850_v23 }
 0x13a   : > { %v700_v39 = vadd.f32 %v637_v35, %v523_v27  ;;  %v708_v40 = vadd.f32 %v669_v36, %v531_v28  ;;  %v2447_v41 = vpop.f32.mrb[2].mxu0  ;;  %v2455_v42 = vpop.f32.mrb[2].mxu1  ;;  %2480 = vmatprep.mubr.msk.f32.mxu1 (!%p2256_p6), %vm876_vm2, %v857_v25  ;;  %v858_v28 = vld [vmem:[%s3171_s16 + $0x48] sm:$0xff] (!%p2256_p6)  ;;  %2471 = vmatprep.mubr.msk.f32.mxu0 (!%p2256_p6), %vm876_vm2, %v851_v26  ;;  %v853_v36 = vld [vmem:[%s3171_s16 + $0x20] sm:$0xff] (!%p2256_p6) }
 0x13b   : > { %719 = vst.msk [vmem:[#allocation2 + $0x10] sm:$0xff] %vm716_vm1, %v702_v33  ;;  %727 = vst.msk [vmem:[#allocation2 + $0x50] sm:$0xff] %vm716_vm1, %v710_v34  ;;  %v703_v43 = vadd.f32 %v2447_v41, %v526_v31  ;;  %v711_v44 = vadd.f32 %v2455_v42, %v534_v32  ;;  %v640_v45 = vpop.f32.mrb[3].mxu0  ;;  %v672_v46 = vpop.f32.mrb[3].mxu1  ;;  %v859_v31 = vld [vmem:[%s3171_s16 + $0x50] sm:$0xff] (!%p2256_p6)  ;;  %v852_v33 = vld [vmem:[%s3171_s16 + $0x18] sm:$0xff] (!%p2256_p6)  ;;  %2481 = vmatmul.mubr.msk.f32.vlgmr.msra.gmra.mrb[0].mxu1 (!%p2256_p6), %vm876_vm2, %v858_v28 }
 0x13c   : > { %717 = vst.msk [vmem:[#allocation2] sm:$0xff] %vm716_vm1, %v700_v39  ;;  %725 = vst.msk [vmem:[#allocation2 + $0x40] sm:$0xff] %vm716_vm1, %v708_v40  ;;  %v701_v47 = vadd.f32 %v640_v45, %v524_v37  ;;  %v709_v48 = vadd.f32 %v672_v46, %v532_v38  ;;  %2483 = vmatprep.mubr.msk.f32.mxu1 (!%p2256_p6), %vm876_vm2, %v859_v31  ;;  %v860_v37 = vld [vmem:[%s3171_s16 + $0x58] sm:$0xff] (!%p2256_p6)  ;;  %v861_v39 = vld [vmem:[%s3171_s16 + $0x60] sm:$0xff] (!%p2256_p6) }
 0x13d   : > { %720 = vst.msk [vmem:[#allocation2 + $0x18] sm:$0xff] %vm716_vm1, %v703_v43  ;;  %728 = vst.msk [vmem:[#allocation2 + $0x58] sm:$0xff] %vm716_vm1, %v711_v44  ;;  %2472 = vmatmul.mubr.msk.f32.gmra.mrb[2].mxu0 (!%p2256_p6), %vm876_vm2, %v852_v33  ;;  %v854_v42 = vld [vmem:[%s3171_s16 + $0x28] sm:$0xff] (!%p2256_p6)  ;;  %v855_v44 = vld [vmem:[%s3171_s16 + $0x30] sm:$0xff] (!%p2256_p6) }
 0x13e   : > { %718 = vst.msk [vmem:[#allocation2 + $0x8] sm:$0xff] %vm716_vm1, %v701_v47  ;;  %726 = vst.msk [vmem:[#allocation2 + $0x48] sm:$0xff] %vm716_vm1, %v709_v48  ;;  %2474 = vmatprep.mubr.msk.f32.mxu0 (!%p2256_p6), %vm876_vm2, %v853_v36  ;;  %v862_v45 = vld [vmem:[%s3171_s16 + $0x68] sm:$0xff] (!%p2256_p6)  ;;  %v863_v47 = vld [vmem:[%s3171_s16 + $0x70] sm:$0xff] (!%p2256_p6) }
 0x13f   : > { %2484 = vmatmul.mubr.msk.f32.gmra.mrb[2].mxu1 (!%p2256_p6), %vm876_vm2, %v860_v37  ;;  %v1489_v31 = vld [vmem:[%s3915_s8 + $0x8] sm:$0xff] (!%p2256_p6) }
 0x140   : > { %v2450_v53 = vpop.f32.mrb[4].mxu0  ;;  %v2458_v54 = vpop.f32.mrb[4].mxu1  ;;  %736 = sbr.rel (%p2256_p6) target bundleno = 1295 (0x50f), region = 106  ;;  %2486 = vmatprep.mubr.msk.f32.mxu1 (!%p2256_p6), %vm876_vm2, %v861_v39  ;;  %v1492_v39 = vld [vmem:[%s3915_s8 + $0x20] sm:$0xff] (!%p2256_p6) }
 0x141   : > { %v706_v57 = vadd.f32 %v2450_v53, %v529_v49  ;;  %v714_v58 = vadd.f32 %v2458_v54, %v537_v50  ;;  %v653_v59 = vpop.f32.mrb[5].mxu0  ;;  %v685_v60 = vpop.f32.mrb[5].mxu1  ;;  %2475 = vmatmul.mubr.msk.f32.gmra.mrb[4].mxu0 (!%p2256_p6), %vm876_vm2, %v854_v42  ;;  %v856_v50 = vld [vmem:[%s3171_s16 + $0x38] sm:$0xff] (!%p2256_p6) }
 0x142   : > { %v704_v63 = vadd.f32 %v653_v59, %v527_v51  ;;  %v712_v0 = vadd.f32 %v685_v60, %v535_v52  ;;  %v2451_v1 = vpop.f32.mrb[6].mxu0  ;;  %v2459_v2 = vpop.f32.mrb[6].mxu1  ;;  %v3230_v10 = vld [vmem:[#allocation2 + $0x10] sm:$0xff] (!%p2256_p6)  ;;  %2477 = vmatprep.mubr.msk.f32.mxu0 (!%p2256_p6), %vm876_vm2, %v855_v44  ;;  %v864_v52 = vld [vmem:[%s3171_s16 + $0x78] sm:$0xff] (!%p2256_p6)  ;;  %v1166_v60 = vld [vmem:[%s3913_s6] sm:$0xff] (!%p2256_p6) }
 0x143   : > { %723 = vst.msk [vmem:[#allocation2 + $0x30] sm:$0xff] %vm716_vm1, %v706_v57  ;;  %731 = vst.msk [vmem:[#allocation2 + $0x70] sm:$0xff] %vm716_vm1, %v714_v58  ;;  %v707_v3 = vadd.f32 %v2451_v1, %v530_v55  ;;  %v715_v4 = vadd.f32 %v2459_v2, %v538_v56  ;;  %v656_v5 = vpop.f32.mrb[7].mxu0  ;;  %v688_v6 = vpop.f32.mrb[7].mxu1  ;;  %v3228_v9 = vld [vmem:[#allocation2] sm:$0xff] (!%p2256_p6)  ;;  %v3289_v38 = vld [vmem:[#allocation2 + $0x50] sm:$0xff] (!%p2256_p6)  ;;  %2487 = vmatmul.mubr.msk.f32.gmra.mrb[4].mxu1 (!%p2256_p6), %vm876_vm2, %v862_v45 }
 0x144   : > { %721 = vst.msk [vmem:[#allocation2 + $0x20] sm:$0xff] %vm716_vm1, %v704_v63  ;;  %729 = vst.msk [vmem:[#allocation2 + $0x60] sm:$0xff] %vm716_vm1, %v712_v0  ;;  %v705_v7 = vadd.f32 %v656_v5, %v528_v61  ;;  %v713_v8 = vadd.f32 %v688_v6, %v536_v62  ;;  %2721 = vrcp.f32 (!%p2256_p6), %v3228_v9  ;;  %v3241_v14 = vld [vmem:[#allocation2 + $0x18] sm:$0xff] (!%p2256_p6)  ;;  %v3273_v30 = vld [vmem:[#allocation2 + $0x40] sm:$0xff] (!%p2256_p6)  ;;  %2489 = vmatprep.mubr.msk.f32.mxu1 (!%p2256_p6), %vm876_vm2, %v863_v47 }
 0x145   : > { %724 = vst.msk [vmem:[#allocation2 + $0x38] sm:$0xff] %vm716_vm1, %v707_v3  ;;  %732 = vst.msk [vmem:[#allocation2 + $0x78] sm:$0xff] %vm716_vm1, %v715_v4  ;;  %v3232_v11 = vld [vmem:[#allocation2 + $0x8] sm:$0xff] (!%p2256_p6)  ;;  %2723 = vrcp.f32 (!%p2256_p6), %v3230_v10  ;;  %v3294_v41 = vld [vmem:[#allocation2 + $0x58] sm:$0xff] (!%p2256_p6)  ;;  %2478 = vmatmul.mubr.msk.f32.gmra.mrb[6].mxu0 (!%p2256_p6), %vm876_vm2, %v856_v50 }
 0x146   : > { %722 = vst.msk [vmem:[#allocation2 + $0x28] sm:$0xff] %vm716_vm1, %v705_v7  ;;  %730 = vst.msk [vmem:[#allocation2 + $0x68] sm:$0xff] %vm716_vm1, %v713_v8  ;;  %2725 = vrcp.f32 (!%p2256_p6), %v3232_v11  ;;  %v3279_v34 = vld [vmem:[#allocation2 + $0x48] sm:$0xff] (!%p2256_p6)  ;;  %v1168_v2 = vld [vmem:[%s3913_s6 + $0x10] sm:$0xff] (!%p2256_p6) }
 0x147   : > { %2727 = vrcp.f32 %v3241_v14  ;;  %2490 = vmatmul.mubr.msk.f32.gmra.mrb[6].mxu1 %vm876_vm2, %v864_v52  ;;  %v1167_v61 = vld [vmem:[%s3913_s6 + $0x8] sm:$0xff]  ;;  %v1169_v3 = vld [vmem:[%s3913_s6 + $0x18] sm:$0xff]  ;;  %v1170_v5 = vld [vmem:[%s3913_s6 + $0x20] sm:$0x1] }
 0x148   : > { %v2574_v63 = vpack.c.bf16 %v1167_v61, %v1166_v60  ;;  %v2578_v4 = vpack.c.bf16 %v1169_v3, %v1168_v2 }
 0x14a   : > { %v3260_v22 = vld [vmem:[#allocation2 + $0x30] sm:$0xff]  ;;  %2575 = vmatprep.subr.bf16.mxu1 %v2574_v63 }
 0x14b   : > { %v3253_v20 = vld [vmem:[#allocation2 + $0x20] sm:$0xff]  ;;  %v3320_v53 = vld [vmem:[#allocation2 + $0x70] sm:$0xff]  ;;  %2577 = vmatpush3.bf16.msra.mxu1 %v2574_v63 }
 0x14c   : > { %2729 = vrcp.f32 %v3253_v20  ;;  %v3263_v24 = vld [vmem:[#allocation2 + $0x38] sm:$0xff]  ;;  %v3305_v46 = vld [vmem:[#allocation2 + $0x60] sm:$0xff]  ;;  %2579 = vmatprep.subr.bf16.mxu1 %v2578_v4 }
 0x14d   : > { %v3256_v21 = vld [vmem:[#allocation2 + $0x28] sm:$0xff]  ;;  %v3323_v55 = vld [vmem:[#allocation2 + $0x78] sm:$0xff] }
 0x14e   : > { %2731 = vrcp.f32 %v3256_v21  ;;  %v2722_v27 = vpop.eup %2721  ;;  %v3310_v49 = vld [vmem:[#allocation2 + $0x68] sm:$0xff] }
 0x14f   : > { %2733 = vrcp.f32 %v3260_v22  ;;  %v2724_v29 = vpop.eup %2723  ;;  %785 = vrot.lane.b32.xlu0 %v2722_v27, %s2994_s24  ;;  %2581 = vmatpush3.bf16.msra.mxu1 %v2578_v4 }
 0x150   : > { %2735 = vrcp.f32 %v3263_v24  ;;  %v2726_v32 = vpop.eup %2725  ;;  %789 = vrot.lane.b32.xlu1 %v2724_v29, %s2994_s24  ;;  %2500 = vmatprep.subr.msk.mxu1 %vm1227_vm3, %v1170_v5 }
 0x151   : > { %v2728_v35 = vpop.eup %2727  ;;  %2737 = vrcp.f32 %v3273_v30 }
 0x152   : > { %2739 = vrcp.f32 %v3279_v34 }
 0x153   : > { %787 = vrot.lane.b32.xlu0 %v2726_v32, %s2994_s24  ;;  %2741 = vrcp.f32 %v3289_v38  ;;  %2501 = vmatpush3.msk.msra.mxu1 %vm1227_vm3, %v1170_v5 }
 0x154   : > { %791 = vrot.lane.b32.xlu1 %v2728_v35, %s2994_s24  ;;  %2743 = vrcp.f32 %v3294_v41  ;;  %v1491_v35 = vld [vmem:[%s3915_s8 + $0x18] sm:$0xff] }
 0x155   : > { %2745 = vrcp.f32 %v3305_v46 }
 0x156   : > { %v2730_v40 = vpop.eup %2729  ;;  %2747 = vrcp.f32 %v3310_v49 }
 0x157   : > { %793 = vrot.lane.b32.xlu0 %v2730_v40, %s2994_s24  ;;  %2749 = vrcp.f32 %v3320_v53  ;;  %v1493_v40 = vld [vmem:[%s3915_s8 + $0x28] sm:$0xff] }
 0x158   : > { %v2732_v43 = vpop.eup %2731  ;;  %2751 = vrcp.f32 %v3323_v55  ;;  %v2590_v45 = vpack.c.bf16 %v1493_v40, %v1492_v39 }
 0x159   : > { %v2734_v48 = vpop.eup %2733  ;;  %795 = vrot.lane.b32.xlu1 %v2732_v43, %s2994_s24 }
 0x15a   : > { %v2736_v51 = vpop.eup %2735 }
 0x15b   : > { %797 = vrot.lane.b32.xlu0 %v2734_v48, %s2994_s24  ;;  %v2738_v54 = vpop.eup %2737 }
 0x15c   : > { %v2740_v56 = vpop.eup %2739 }
 0x15d   : > { %799 = vrot.lane.b32.xlu1 %v2736_v51, %s2994_s24  ;;  %v2742_v57 = vpop.eup %2741 }
 0x15e   : > { %v2744_v58 = vpop.eup %2743 }
 0x15f   : > { %801 = vrot.lane.b32.xlu0 %v2738_v54, %s2994_s24  ;;  %v2746_v59 = vpop.eup %2745 }
 0x160   : > { %v2748_v62 = vpop.eup %2747 }
 0x161   : > { %803 = vrot.lane.b32.xlu1 %v2740_v56, %s2994_s24  ;;  %v2750_v0 = vpop.eup %2749 }
 0x162   : > { %v2752_v1 = vpop.eup %2751 }
 0x163   : > { %805 = vrot.lane.b32.xlu0 %v2742_v57, %s2994_s24 }
 0x165   : > { %807 = vrot.lane.b32.xlu1 %v2744_v58, %s2994_s24 }
 0x167   : > { %809 = vrot.lane.b32.xlu0 %v2746_v59, %s2994_s24 }
 0x169   : > { %811 = vrot.lane.b32.xlu1 %v2748_v62, %s2994_s24 }
 0x16b   : > { %813 = vrot.lane.b32.xlu0 %v2750_v0, %s2994_s24 }
 0x16d   : > { %815 = vrot.lane.b32.xlu1 %v2752_v1, %s2994_s24 }
 0x1c1   : > { %v786_v6 = vpop.permute.xlu0 %785 }
 0x1c2   : > { %v833_v7 = vmul.f32 %v786_v6, %v3228_v9  ;;  %v790_v8 = vpop.permute.xlu1 %789 }
 0x1c3   : > { %v835_v12 = vmul.f32 %v790_v8, %v3230_v10 }
 0x1c4   : > { %1102 = vrot.lane.b32.xlu0 %v833_v7, %s2995_s21 }
 0x1c5   : > { %v788_v13 = vpop.permute.xlu0 %787 }
 0x1c6   : > { %v834_v15 = vmul.f32 %v788_v13, %v3232_v11  ;;  %v792_v16 = vpop.permute.xlu1 %791 }
 0x1c7   : > { %v836_v17 = vmul.f32 %v792_v16, %v3241_v14 }
 0x1c8   : > { %1106 = vrot.lane.b32.xlu0 %v835_v12, %s2995_s21  ;;  %1104 = vrot.lane.b32.xlu1 %v834_v15, %s2995_s21 }
 0x1c9   : > { %v794_v18 = vpop.permute.xlu0 %793 }
 0x1ca   : > { %v837_v19 = vmul.f32 %v794_v18, %v3253_v20 }
 0x1cb   : > { %v796_v9 = vpop.permute.xlu1 %795 }
 0x1cc   : > { %1108 = vrot.lane.b32.xlu1 %v836_v17, %s2995_s21  ;;  %v838_v23 = vmul.f32 %v796_v9, %v3256_v21  ;;  %1110 = vrot.lane.b32.xlu0 %v837_v19, %s2995_s21 }
 0x1cd   : > { %v798_v10 = vpop.permute.xlu0 %797 }
 0x1ce   : > { %v839_v11 = vmul.f32 %v798_v10, %v3260_v22 }
 0x1cf   : > { %v800_v25 = vpop.permute.xlu1 %799 }
 0x1d0   : > { %1112 = vrot.lane.b32.xlu1 %v838_v23, %s2995_s21  ;;  %v840_v26 = vmul.f32 %v800_v25, %v3263_v24  ;;  %1114 = vrot.lane.b32.xlu0 %v839_v11, %s2995_s21 }
 0x1d1   : > { %v802_v14 = vpop.permute.xlu0 %801 }
 0x1d2   : > { %v841_v20 = vmul.f32 %v802_v14, %v3273_v30  ;;  %v1488_v30 = vld [vmem:[%s3915_s8] sm:$0xff] }
 0x1d3   : > { %v804_v27 = vpop.permute.xlu1 %803  ;;  %v2582_v33 = vpack.c.bf16 %v1489_v31, %v1488_v30 }
 0x1d4   : > { %1116 = vrot.lane.b32.xlu1 %v840_v26, %s2995_s21  ;;  %v842_v21 = vmul.f32 %v804_v27, %v3279_v34  ;;  %1118 = vrot.lane.b32.xlu0 %v841_v20, %s2995_s21  ;;  %v1490_v34 = vld [vmem:[%s3915_s8 + $0x10] sm:$0xff] }
 0x1d5   : > { %v806_v28 = vpop.permute.xlu0 %805  ;;  %2583 = vmatprep.subr.bf16.mxu0 %v2582_v33 }
 0x1d6   : > { %v843_v22 = vmul.f32 %v806_v28, %v3289_v38  ;;  %v2586_v38 = vpack.c.bf16 %v1491_v35, %v1490_v34  ;;  %2585 = vmatpush3.bf16.msra.mxu0 %v2582_v33 }
 0x1d7   : > { %v808_v29 = vpop.permute.xlu1 %807 }
 0x1d8   : > { %1120 = vrot.lane.b32.xlu1 %v842_v21, %s2995_s21  ;;  %v844_v24 = vmul.f32 %v808_v29, %v3294_v41  ;;  %1122 = vrot.lane.b32.xlu0 %v843_v22, %s2995_s21 }
 0x1d9   : > { %v810_v32 = vpop.permute.xlu0 %809  ;;  %2587 = vmatprep.subr.bf16.mxu0 %v2586_v38 }
 0x1da   : > { %v845_v36 = vmul.f32 %v810_v32, %v3305_v46  ;;  %2589 = vmatpush3.bf16.msra.mxu0 %v2586_v38 }
 0x1db   : > { %v812_v37 = vpop.permute.xlu1 %811  ;;  %2591 = vmatprep.subr.bf16.mxu0 %v2590_v45 }
 0x1dc   : > { %1124 = vrot.lane.b32.xlu1 %v844_v24, %s2995_s21  ;;  %v846_v41 = vmul.f32 %v812_v37, %v3310_v49  ;;  %1126 = vrot.lane.b32.xlu0 %v845_v36, %s2995_s21 }
 0x1dd   : > { %v814_v42 = vpop.permute.xlu0 %813 }
 0x1de   : > { %v847_v43 = vmul.f32 %v814_v42, %v3320_v53  ;;  %2593 = vmatpush3.bf16.msra.mxu0 %v2590_v45 }
 0x1df   : > { %v816_v44 = vpop.permute.xlu1 %815 }
 0x1e0   : > { %1128 = vrot.lane.b32.xlu1 %v846_v41, %s2995_s21  ;;  %v848_v46 = vmul.f32 %v816_v44, %v3323_v55  ;;  %1130 = vrot.lane.b32.xlu0 %v847_v43, %s2995_s21  ;;  %v3404_v55 = vld [vmem:[%s3912_s5] ss:$0 sm:$0xff] }
 0x1e4   : > { %1132 = vrot.lane.b32.xlu1 %v848_v46, %s2995_s21 }
 0x20c   : > { %v2470_v47 = vpop.f32.mrb[0].mxu0 }
 0x20d   : > { %v991_v48 = vpop.f32.mrb[1].mxu0  ;;  %v997_v3 = vadd.f32 %v2470_v47, %v3404_v55 }
 0x20e   : > { %v2482_v49 = vpop.f32.mrb[0].mxu1  ;;  %v992_v61 = vadd.f32 %v3404_v55, %v991_v48 }
 0x20f   : > { %v1031_v50 = vpop.f32.mrb[1].mxu1  ;;  %v1071_v8 = vmax.f32 %v997_v3, 0.0  ;;  %v1037_v33 = vadd.f32 %v2482_v49, %v3404_v55  ;;  %v2274_v3 = vld [vmem:[%s3914_s7] ss:$0 sm:$0xff] }
 0x210   : > { %v2473_v51 = vpop.f32.mrb[2].mxu0  ;;  %v1070_v1 = vmax.f32 %v992_v61, 0.0  ;;  %v1032_v20 = vadd.f32 %v3404_v55, %v1031_v50 }
 0x211   : > { %v1001_v52 = vpop.f32.mrb[3].mxu0  ;;  %v1007_v12 = vadd.f32 %v2473_v51, %v3404_v55  ;;  %v1079_v40 = vmax.f32 %v1037_v33, 0.0 }
 0x212   : > { %v2485_v53 = vpop.f32.mrb[2].mxu1  ;;  %v1002_v2 = vadd.f32 %v3404_v55, %v1001_v52  ;;  %v1078_v24 = vmax.f32 %v1032_v20, 0.0 }
 0x213   : > { %v1041_v54 = vpop.f32.mrb[3].mxu1  ;;  %v1073_v9 = vmax.f32 %v1007_v12, 0.0  ;;  %v1047_v41 = vadd.f32 %v2485_v53, %v3404_v55 }
 0x214   : > { %v2476_v56 = vpop.f32.mrb[4].mxu0  ;;  %v1072_v5 = vmax.f32 %v1002_v2, 0.0  ;;  %v1042_v31 = vadd.f32 %v3404_v55, %v1041_v54 }
 0x215   : > { %v1011_v57 = vpop.f32.mrb[5].mxu0  ;;  %v1017_v23 = vadd.f32 %v2476_v56, %v3404_v55  ;;  %v1081_v48 = vmax.f32 %v1047_v41, 0.0 }
 0x216   : > { %v3406_v58 = vpop.f32.mrb[4].mxu1  ;;  %v1012_v7 = vadd.f32 %v3404_v55, %v1011_v57  ;;  %v1080_v37 = vmax.f32 %v1042_v31, 0.0 }
 0x217   : > { %v1051_v59 = vpop.f32.mrb[5].mxu1  ;;  %v1075_v27 = vmax.f32 %v1017_v23, 0.0  ;;  %v1057_v49 = vadd.f32 %v3406_v58, %v3404_v55 }
 0x218   : > { %v2479_v60 = vpop.f32.mrb[6].mxu0  ;;  %v1074_v18 = vmax.f32 %v1012_v7, 0.0  ;;  %v1052_v39 = vadd.f32 %v3404_v55, %v1051_v59 }
 0x219   : > { %v1021_v62 = vpop.f32.mrb[7].mxu0  ;;  %v1027_v21 = vadd.f32 %v2479_v60, %v3404_v55  ;;  %v1083_v56 = vmax.f32 %v1057_v49, 0.0 }
 0x21a   : > { %v3409_v63 = vpop.f32.mrb[6].mxu1  ;;  %v1022_v19 = vadd.f32 %v3404_v55, %v1021_v62  ;;  %v1082_v45 = vmax.f32 %v1052_v39, 0.0 }
 0x21b   : > { %v1061_v0 = vpop.f32.mrb[7].mxu1  ;;  %v1077_v32 = vmax.f32 %v1027_v21, 0.0  ;;  %v1067_v57 = vadd.f32 %v3409_v63, %v3404_v55  ;;  %v1494_v63 = vld [vmem:[%s3915_s8 + $0x30] sm:$0xff] }
 0x21c   : > { %v1076_v26 = vmax.f32 %v1022_v19, 0.0  ;;  %v1062_v47 = vadd.f32 %v3404_v55, %v1061_v0 }
 0x21d   : > { %v1085_v62 = vmax.f32 %v1067_v57, 0.0 }
 0x21e   : > { %v1084_v53 = vmax.f32 %v1062_v47, 0.0 }
 0x236   : > { %v1103_v4 = vpop.permute.xlu0 %1102 }
 0x237   : > { %v3414_v6 = vsel %vm876_vm2, %v1070_v1, %v1103_v4  ;;  %v1495_v1 = vld [vmem:[%s3915_s8 + $0x38] sm:$0xff] }
 0x238   : > { %2502 = vmatprep.mubr.msk.f32.mxu1 %vm1178_vm4, %v3414_v6  ;;  %v2594_v2 = vpack.c.bf16 %v1495_v1, %v1494_v63 }
 0x23a   : > { %v1105_v13 = vpop.permute.xlu1 %1104  ;;  %v1107_v15 = vpop.permute.xlu0 %1106  ;;  %2595 = vmatprep.subr.bf16.mxu0 %v2594_v2 }
 0x23b   : > { %v3421_v16 = vsel %vm876_vm2, %v1071_v8, %v1105_v13  ;;  %v3424_v17 = vsel %vm876_vm2, %v1072_v5, %v1107_v15  ;;  %2597 = vmatpush3.bf16.msra.mxu0 %v2594_v2 }
 0x23c   : > { %2503 = vmatmul.mubr.msk.f32.vlgmr.msra.gmra.mrb[8].mxu1 %vm1178_vm4, %v3421_v16 }
 0x23d   : > { %2505 = vmatprep.mubr.msk.f32.mxu1 %vm1178_vm4, %v3424_v17 }
 0x23e   : > { %v1109_v10 = vpop.permute.xlu1 %1108  ;;  %v1111_v11 = vpop.permute.xlu0 %1110 }
 0x23f   : > { %v3433_v25 = vsel %vm876_vm2, %v1073_v9, %v1109_v10  ;;  %v3436_v14 = vsel %vm876_vm2, %v1074_v18, %v1111_v11 }
 0x240   : > { %2506 = vmatmul.mubr.msk.f32.gmra.mrb[10].mxu1 %vm1178_vm4, %v3433_v25 }
 0x241   : > { %2508 = vmatprep.mubr.msk.f32.mxu1 %vm1178_vm4, %v3436_v14 }
 0x242   : > { %v1113_v28 = vpop.permute.xlu1 %1112  ;;  %v1115_v22 = vpop.permute.xlu0 %1114 }
 0x243   : > { %v3445_v29 = vsel %vm876_vm2, %v1075_v27, %v1113_v28  ;;  %v3448_v30 = vsel %vm876_vm2, %v1076_v26, %v1115_v22 }
 0x244   : > { %2509 = vmatmul.mubr.msk.f32.gmra.mrb[12].mxu1 %vm1178_vm4, %v3445_v29 }
 0x245   : > { %2511 = vmatprep.mubr.msk.f32.mxu1 %vm1178_vm4, %v3448_v30 }
 0x246   : > { %v1117_v34 = vpop.permute.xlu1 %1116  ;;  %v1119_v35 = vpop.permute.xlu0 %1118 }
 0x247   : > { %v3457_v36 = vsel %vm876_vm2, %v1077_v32, %v1117_v34  ;;  %v3460_v38 = vsel %vm876_vm2, %v1078_v24, %v1119_v35 }
 0x248   : > { %2512 = vmatmul.mubr.msk.f32.gmra.mrb[14].mxu1 %vm1178_vm4, %v3457_v36 }
 0x249   : > { %2514 = vmatprep.mubr.msk.f32.mxu1 %vm1178_vm4, %v3460_v38 }
 0x24a   : > { %v1121_v42 = vpop.permute.xlu1 %1120  ;;  %v1123_v43 = vpop.permute.xlu0 %1122 }
 0x24b   : > { %v3469_v44 = vsel %vm876_vm2, %v1079_v40, %v1121_v42  ;;  %v3472_v46 = vsel %vm876_vm2, %v1080_v37, %v1123_v43 }
 0x24c   : > { %2515 = vmatmul.mubr.msk.f32.gmra.mrb[16].mxu1 %vm1178_vm4, %v3469_v44 }
 0x24d   : > { %2517 = vmatprep.mubr.msk.f32.mxu1 %vm1178_vm4, %v3472_v46 }
 0x24e   : > { %v1125_v50 = vpop.permute.xlu1 %1124  ;;  %v1127_v51 = vpop.permute.xlu0 %1126 }
 0x24f   : > { %v3482_v52 = vsel %vm876_vm2, %v1081_v48, %v1125_v50  ;;  %v3485_v54 = vsel %vm876_vm2, %v1082_v45, %v1127_v51 }
 0x250   : > { %2518 = vmatmul.mubr.msk.f32.gmra.mrb[18].mxu1 %vm1178_vm4, %v3482_v52 }
 0x251   : > { %2520 = vmatprep.mubr.msk.f32.mxu1 %vm1178_vm4, %v3485_v54 }
 0x252   : > { %v1129_v58 = vpop.permute.xlu1 %1128  ;;  %v1131_v59 = vpop.permute.xlu0 %1130 }
 0x253   : > { %v3494_v60 = vsel %vm876_vm2, %v1083_v56, %v1129_v58  ;;  %v3497_v61 = vsel %vm876_vm2, %v1084_v53, %v1131_v59 }
 0x254   : > { %2521 = vmatmul.mubr.msk.f32.gmra.mrb[20].mxu1 %vm1178_vm4, %v3494_v60 }
 0x255   : > { %2523 = vmatprep.mubr.msk.f32.mxu1 %vm1178_vm4, %v3497_v61 }
 0x256   : > { %v1133_v0 = vpop.permute.xlu1 %1132 }
 0x257   : > { %v3504_v55 = vsel %vm876_vm2, %v1085_v62, %v1133_v0 }
 0x258   : > { %2524 = vmatmul.mubr.msk.f32.gmra.mrb[22].mxu1 %vm1178_vm4, %v3504_v55 }
 0x30f   : > { %v2504_v4 = vpop.f32.mrb[8].mxu1 }
 0x310   : > { %v3517_v5 = vadd.f32 %v2504_v4, %v2274_v3  ;;  %v1297_v7 = vpop.f32.mrb[9].mxu1 }
 0x311   : > { %v3519_v8 = vadd.f32 %v2274_v3, %v1297_v7  ;;  %v3584_v7 = vld [vmem:[%s3943_s30] ss:$0 sm:$0xff] }
 0x312   : > { %v1377_v15 = vmax.f32 %v3517_v5, 0.0 }
 0x313   : > { %v1376_v12 = vmax.f32 %v3519_v8, 0.0  ;;  %v2507_v13 = vpop.f32.mrb[10].mxu1 }
 0x314   : > { %v3523_v18 = vadd.f32 %v2507_v13, %v2274_v3  ;;  %v1307_v19 = vpop.f32.mrb[11].mxu1 }
 0x315   : > { %v3525_v9 = vadd.f32 %v2274_v3, %v1307_v19  ;;  %2542 = vmatprep.mubr.msk.f32.mxu0 %vm1503_vm5, %v1376_v12 }
 0x316   : > { %2543 = vmatmul.mubr.msk.f32.vlgmr.msra.gmra.mrb[8].mxu0 %vm1503_vm5, %v1377_v15  ;;  %v1379_v11 = vmax.f32 %v3523_v18, 0.0 }
 0x317   : > { %v1378_v23 = vmax.f32 %v3525_v9, 0.0  ;;  %v2510_v10 = vpop.f32.mrb[12].mxu1 }
 0x318   : > { %v3531_v26 = vadd.f32 %v2510_v10, %v2274_v3  ;;  %v1317_v20 = vpop.f32.mrb[13].mxu1 }
 0x319   : > { %v3533_v27 = vadd.f32 %v2274_v3, %v1317_v20  ;;  %2545 = vmatprep.mubr.msk.f32.mxu0 %vm1503_vm5, %v1378_v23  ;;  %v2292_v23 = vmul.f32 -1.442695, %v3519_v8  ;;  %v2294_v8 = vmul.f32 -1.442695, %v3525_v9 }
 0x31a   : > { %2546 = vmatmul.mubr.msk.f32.gmra.mrb[10].mxu0 %vm1503_vm5, %v1379_v11  ;;  %v1381_v22 = vmax.f32 %v3531_v26, 0.0  ;;  %v2295_v11 = vmul.f32 -1.442695, %v3523_v18  ;;  %v2297_v18 = vmul.f32 -1.442695, %v3531_v26 }
 0x31b   : > { %v1380_v21 = vmax.f32 %v3533_v27, 0.0  ;;  %v2513_v28 = vpop.f32.mrb[14].mxu1  ;;  %v2296_v9 = vmul.f32 -1.442695, %v3533_v27 }
 0x31c   : > { %v3539_v24 = vadd.f32 %v2513_v28, %v2274_v3  ;;  %v1327_v31 = vpop.f32.mrb[15].mxu1 }
 0x31d   : > { %v3541_v32 = vadd.f32 %v2274_v3, %v1327_v31  ;;  %2548 = vmatprep.mubr.msk.f32.mxu0 %vm1503_vm5, %v1380_v21 }
 0x31e   : > { %2549 = vmatmul.mubr.msk.f32.gmra.mrb[12].mxu0 %vm1503_vm5, %v1381_v22  ;;  %v1383_v35 = vmax.f32 %v3539_v24, 0.0  ;;  %v2299_v26 = vmul.f32 -1.442695, %v3539_v24 }
 0x31f   : > { %v1382_v33 = vmax.f32 %v3541_v32, 0.0  ;;  %v2516_v34 = vpop.f32.mrb[16].mxu1  ;;  %v2298_v27 = vmul.f32 -1.442695, %v3541_v32 }
 0x320   : > { %v3547_v37 = vadd.f32 %v2516_v34, %v2274_v3  ;;  %v1337_v39 = vpop.f32.mrb[17].mxu1 }
 0x321   : > { %v3549_v40 = vadd.f32 %v2274_v3, %v1337_v39  ;;  %2551 = vmatprep.mubr.msk.f32.mxu0 %vm1503_vm5, %v1382_v33 }
 0x322   : > { %2552 = vmatmul.mubr.msk.f32.gmra.mrb[14].mxu0 %vm1503_vm5, %v1383_v35  ;;  %v1385_v43 = vmax.f32 %v3547_v37, 0.0 }
 0x323   : > { %v1384_v41 = vmax.f32 %v3549_v40, 0.0  ;;  %v2519_v42 = vpop.f32.mrb[18].mxu1  ;;  %v2300_v32 = vmul.f32 -1.442695, %v3549_v40 }
 0x324   : > { %v3555_v45 = vadd.f32 %v2519_v42, %v2274_v3  ;;  %v1347_v47 = vpop.f32.mrb[19].mxu1 }
 0x325   : > { %v3557_v48 = vadd.f32 %v2274_v3, %v1347_v47  ;;  %2554 = vmatprep.mubr.msk.f32.mxu0 %vm1503_vm5, %v1384_v41 }
 0x326   : > { %2555 = vmatmul.mubr.msk.f32.gmra.mrb[16].mxu0 %vm1503_vm5, %v1385_v43  ;;  %v1387_v51 = vmax.f32 %v3555_v45, 0.0 }
 0x327   : > { %v1386_v49 = vmax.f32 %v3557_v48, 0.0  ;;  %v2522_v50 = vpop.f32.mrb[20].mxu1  ;;  %v2302_v40 = vmul.f32 -1.442695, %v3557_v48 }
 0x328   : > { %v3563_v53 = vadd.f32 %v2522_v50, %v2274_v3  ;;  %v1357_v56 = vpop.f32.mrb[21].mxu1 }
 0x329   : > { %v3565_v57 = vadd.f32 %v2274_v3, %v1357_v56  ;;  %2557 = vmatprep.mubr.msk.f32.mxu0 %vm1503_vm5, %v1386_v49 }
 0x32a   : > { %2558 = vmatmul.mubr.msk.f32.gmra.mrb[18].mxu0 %vm1503_vm5, %v1387_v51  ;;  %v1389_v62 = vmax.f32 %v3563_v53, 0.0  ;;  %v2305_v48 = vmul.f32 -1.442695, %v3563_v53 }
 0x32b   : > { %v1388_v58 = vmax.f32 %v3565_v57, 0.0  ;;  %v2525_v59 = vpop.f32.mrb[22].mxu1 }
 0x32c   : > { %v3571_v0 = vadd.f32 %v2525_v59, %v2274_v3  ;;  %v1367_v63 = vpop.f32.mrb[23].mxu1 }
 0x32d   : > { %v3573_v1 = vadd.f32 %v2274_v3, %v1367_v63  ;;  %2560 = vmatprep.mubr.msk.f32.mxu0 %vm1503_vm5, %v1388_v58  ;;  %v2293_v3 = vmul.f32 -1.442695, %v3517_v5  ;;  %v2301_v58 = vmul.f32 -1.442695, %v3547_v37 }
 0x32e   : > { %2561 = vmatmul.mubr.msk.f32.gmra.mrb[20].mxu0 %vm1503_vm5, %v1389_v62  ;;  %v1391_v4 = vmax.f32 %v3571_v0, 0.0 }
 0x32f   : > { %v1390_v2 = vmax.f32 %v3573_v1, 0.0  ;;  %2753 = vpow2.f32 %v2293_v3 }
 0x330   : > { %2755 = vpow2.f32 %v2292_v23 }
 0x331   : > { %2563 = vmatprep.mubr.msk.f32.mxu0 %vm1503_vm5, %v1390_v2  ;;  %2757 = vpow2.f32 %v2295_v11 }
 0x332   : > { %2564 = vmatmul.mubr.msk.f32.gmra.mrb[22].mxu0 %vm1503_vm5, %v1391_v4  ;;  %2759 = vpow2.f32 %v2294_v8 }
 0x333   : > { %2761 = vpow2.f32 %v2297_v18 }
 0x334   : > { %2763 = vpow2.f32 %v2296_v9 }
 0x335   : > { %2765 = vpow2.f32 %v2299_v26 }
 0x336   : > { %2767 = vpow2.f32 %v2298_v27 }
 0x339   : > { %v2754_v42 = vpop.eup %2753 }
 0x33a   : > { %v2756_v49 = vpop.eup %2755  ;;  %v1441_v50 = vadd.f32 1.0, %v2754_v42 }
 0x33b   : > { %v2758_v56 = vpop.eup %2757  ;;  %v1440_v62 = vadd.f32 1.0, %v2756_v49 }
 0x33c   : > { %v2760_v4 = vpop.eup %2759  ;;  %2769 = vrcp.f32 %v1441_v50 }
 0x33d   : > { %v2762_v3 = vpop.eup %2761  ;;  %2771 = vpow2.f32 %v2301_v58 }
 0x33e   : > { %2773 = vpow2.f32 %v2300_v32  ;;  %v2764_v8 = vpop.eup %2763 }
 0x33f   : > { %2775 = vrcp.f32 %v1440_v62  ;;  %v2766_v18 = vpop.eup %2765 }
 0x340   : > { %v2768_v42 = vpop.eup %2767  ;;  %v1447_v27 = vadd.f32 1.0, %v2766_v18 }
 0x341   : > { %v1446_v50 = vadd.f32 1.0, %v2768_v42 }
 0x3e9   : > { %v2544_v12 = vpop.f32.mrb[8].mxu0 }
 0x3ea   : > { %v3588_v13 = vadd.f32 %v2544_v12, %v3584_v7  ;;  %v1618_v15 = vpop.f32.mrb[9].mxu0  ;;  %v1443_v12 = vadd.f32 1.0, %v2758_v56 }
 0x3eb   : > { %v3591_v19 = vadd.f32 %v3584_v7, %v1618_v15  ;;  %v2303_v15 = vmul.f32 -1.442695, %v3555_v45 }
 0x3ec   : > { %1747 = vrot.lane.b32.xlu1 %v3588_v13, %s2994_s24  ;;  %2777 = vrcp.f32 %v1443_v12 }
 0x3ed   : > { %1745 = vrot.lane.b32.xlu0 %v3591_v19, %s2994_s24  ;;  %v2547_v10 = vpop.f32.mrb[10].mxu0  ;;  %2779 = vpow2.f32 %v2303_v15 }
 0x3ee   : > { %v3600_v5 = vadd.f32 %v2547_v10, %v3584_v7  ;;  %v1628_v20 = vpop.f32.mrb[11].mxu0  ;;  %v1442_v10 = vadd.f32 1.0, %v2760_v4  ;;  %2781 = vpow2.f32 %v2302_v40 }
 0x3ef   : > { %v3603_v21 = vadd.f32 %v3584_v7, %v1628_v20 }
 0x3f0   : > { %1751 = vrot.lane.b32.xlu1 %v3600_v5, %s2994_s24  ;;  %2783 = vrcp.f32 %v1442_v10 }
 0x3f1   : > { %1749 = vrot.lane.b32.xlu0 %v3603_v21, %s2994_s24  ;;  %v2550_v28 = vpop.f32.mrb[12].mxu0 }
 0x3f2   : > { %v3612_v22 = vadd.f32 %v2550_v28, %v3584_v7  ;;  %v1638_v31 = vpop.f32.mrb[13].mxu0  ;;  %v1445_v28 = vadd.f32 1.0, %v2762_v3 }
 0x3f3   : > { %v3615_v33 = vadd.f32 %v3584_v7, %v1638_v31  ;;  %v2304_v31 = vmul.f32 -1.442695, %v3565_v57  ;;  %v2770_v57 = vpop.eup %2769 }
 0x3f4   : > { %1755 = vrot.lane.b32.xlu1 %v3612_v22, %s2994_s24  ;;  %2785 = vrcp.f32 %v1445_v28  ;;  %v2772_v49 = vpop.eup %2771 }
 0x3f5   : > { %1753 = vrot.lane.b32.xlu0 %v3615_v33, %s2994_s24  ;;  %v2553_v34 = vpop.f32.mrb[14].mxu0  ;;  %2787 = vpow2.f32 %v2305_v48  ;;  %v2774_v56 = vpop.eup %2773  ;;  %v1449_v58 = vadd.f32 1.0, %v2772_v49  ;;  %v1698_v49 = vld [vmem:[%s3176_s23 + $0x8] sm:$0xff] }
 0x3f6   : > { %v3624_v35 = vadd.f32 %v2553_v34, %v3584_v7  ;;  %v1648_v39 = vpop.f32.mrb[15].mxu0  ;;  %v1444_v34 = vadd.f32 1.0, %v2764_v8  ;;  %2789 = vpow2.f32 %v2304_v31  ;;  %vm1714_vm6 = vcmp.gt.f32.partialorder %v1698_v49, 0.0 }
 0x3f7   : > { %v3627_v41 = vadd.f32 %v3584_v7, %v1648_v39 }
 0x3f8   : > { %1759 = vrot.lane.b32.xlu1 %v3624_v35, %s2994_s24  ;;  %2791 = vrcp.f32 %v1444_v34 }
 0x3f9   : > { %1757 = vrot.lane.b32.xlu0 %v3627_v41, %s2994_s24  ;;  %v2556_v43 = vpop.f32.mrb[16].mxu0  ;;  %2793 = vrcp.f32 %v1447_v27 }
 0x3fa   : > { %v3635_v24 = vadd.f32 %v2556_v43, %v3584_v7  ;;  %v1658_v47 = vpop.f32.mrb[17].mxu0  ;;  %v2307_v43 = vmul.f32 -1.442695, %v3571_v0 }
 0x3fb   : > { %v3638_v51 = vadd.f32 %v3584_v7, %v1658_v47  ;;  %v2306_v47 = vmul.f32 -1.442695, %v3573_v1  ;;  %v1448_v1 = vadd.f32 1.0, %v2774_v56  ;;  %v1700_v56 = vld [vmem:[%s3176_s23 + $0x18] sm:$0xff] }
 0x3fc   : > { %1763 = vrot.lane.b32.xlu1 %v3635_v24, %s2994_s24  ;;  %2795 = vpow2.f32 %v2307_v43  ;;  %vm1716_vm8 = vcmp.gt.f32.partialorder %v1700_v56, 0.0  ;;  %v1707_v56 = vld [vmem:[%s3176_s23 + $0x50] sm:$0xff] }
 0x3fd   : > { %1761 = vrot.lane.b32.xlu0 %v3638_v51, %s2994_s24  ;;  %v2559_v59 = vpop.f32.mrb[18].mxu0  ;;  %2797 = vpow2.f32 %v2306_v47  ;;  %vm1723_vm1 = vcmp.gt.f32.partialorder %v1707_v56, 0.0 }
 0x3fe   : > { %v3647_v63 = vadd.f32 %v2559_v59, %v3584_v7  ;;  %v1668_v2 = vpop.f32.mrb[19].mxu0  ;;  %2799 = vrcp.f32 %v1446_v50  ;;  %v1697_v50 = vld [vmem:[%s3176_s23] sm:$0xff] }
 0x3ff   : > { %v3650_v37 = vadd.f32 %v3584_v7, %v1668_v2  ;;  %2801 = vrcp.f32 %v1449_v58  ;;  %vm1713_vm7 = vcmp.gt.f32.partialorder %v1697_v50, 0.0 }
 0x400   : > { %1767 = vrot.lane.b32.xlu1 %v3647_v63, %s2994_s24  ;;  %2803 = vrcp.f32 %v1448_v1 }
 0x401   : > { %1765 = vrot.lane.b32.xlu0 %v3650_v37, %s2994_s24  ;;  %v2562_v23 = vpop.f32.mrb[20].mxu0 }
 0x402   : > { %v3659_v11 = vadd.f32 %v2562_v23, %v3584_v7  ;;  %v1678_v20 = vpop.f32.mrb[21].mxu0 }
 0x403   : > { %v3662_v45 = vadd.f32 %v3584_v7, %v1678_v20 }
 0x404   : > { %1771 = vrot.lane.b32.xlu1 %v3659_v11, %s2994_s24 }
 0x405   : > { %1769 = vrot.lane.b32.xlu0 %v3662_v45, %s2994_s24  ;;  %v2565_v9 = vpop.f32.mrb[22].mxu0 }
 0x406   : > { %v3671_v26 = vadd.f32 %v2565_v9, %v3584_v7  ;;  %v1688_v39 = vpop.f32.mrb[23].mxu0 }
 0x407   : > { %v3674_v53 = vadd.f32 %v3584_v7, %v1688_v39  ;;  %v2776_v7 = vpop.eup %2775 }
 0x408   : > { %1775 = vrot.lane.b32.xlu1 %v3671_v26, %s2994_s24  ;;  %v2778_v0 = vpop.eup %2777 }
 0x409   : > { %1773 = vrot.lane.b32.xlu0 %v3674_v53, %s2994_s24  ;;  %v2780_v32 = vpop.eup %2779  ;;  %s2997_s24 = smov 34  }
 0x40a   : > { %v2782_v59 = vpop.eup %2781  ;;  %v1451_v4 = vadd.f32 1.0, %v2780_v32 }
 0x40b   : > { %v2784_v62 = vpop.eup %2783  ;;  %v1450_v3 = vadd.f32 1.0, %v2782_v59 }
 0x40c   : > { %1923 = vrot.lane.b32.xlu1 %v2770_v57, %s2996_s27  ;;  %v2786_v2 = vpop.eup %2785  ;;  %2805 = vrcp.f32 %v1451_v4 }
 0x40d   : > { %1921 = vrot.lane.b32.xlu0 %v2776_v7, %s2996_s27  ;;  %v2788_v12 = vpop.eup %2787  ;;  %2807 = vrcp.f32 %v1450_v3 }
 0x40e   : > { %v2790_v15 = vpop.eup %2789  ;;  %v1453_v10 = vadd.f32 1.0, %v2788_v12  ;;  %v1701_v12 = vld [vmem:[%s3176_s23 + $0x20] sm:$0xff] }
 0x40f   : > { %v2792_v40 = vpop.eup %2791  ;;  %v1452_v8 = vadd.f32 1.0, %v2790_v15  ;;  %vm1717_vm11 = vcmp.gt.f32.partialorder %v1701_v12, 0.0  ;;  %v1709_v12 = vld [vmem:[%s3176_s23 + $0x60] sm:$0xff] }
 0x410   : > { %1927 = vrot.lane.b32.xlu1 %v2778_v0, %s2996_s27  ;;  %v2794_v23 = vpop.eup %2793  ;;  %2809 = vrcp.f32 %v1453_v10  ;;  %v1699_v0 = vld [vmem:[%s3176_s23 + $0x10] sm:$0xff]  ;;  %vm1725_vm3 = vcmp.gt.f32.partialorder %v1709_v12, 0.0 }
 0x411   : > { %1925 = vrot.lane.b32.xlu0 %v2784_v62, %s2996_s27  ;;  %v2796_v20 = vpop.eup %2795  ;;  %2811 = vrcp.f32 %v1452_v8  ;;  %vm1715_vm9 = vcmp.gt.f32.partialorder %v1699_v0, 0.0 }
 0x412   : > { %v2798_v28 = vpop.eup %2797  ;;  %v1455_v48 = vadd.f32 1.0, %v2796_v20  ;;  %v1703_v20 = vld [vmem:[%s3176_s23 + $0x30] sm:$0xff] }
 0x413   : > { %v2800_v18 = vpop.eup %2799  ;;  %v1454_v31 = vadd.f32 1.0, %v2798_v28  ;;  %vm1719_vm13 = vcmp.gt.f32.partialorder %v1703_v20, 0.0 }
 0x414   : > { %1931 = vrot.lane.b32.xlu1 %v2786_v2, %s2996_s27  ;;  %v2802_v9 = vpop.eup %2801  ;;  %2813 = vrcp.f32 %v1455_v48  ;;  %v1702_v2 = vld [vmem:[%s3176_s23 + $0x28] sm:$0xff] }
 0x415   : > { %1929 = vrot.lane.b32.xlu0 %v2792_v40, %s2996_s27  ;;  %v2804_v34 = vpop.eup %2803  ;;  %2815 = vrcp.f32 %v1454_v31  ;;  %vm1718_vm10 = vcmp.gt.f32.partialorder %v1702_v2, 0.0 }
 0x416   : > { %v2806_v39 = vpop.eup %2805 }
 0x417   : > { %v2808_v42 = vpop.eup %2807 }
 0x418   : > { %1935 = vrot.lane.b32.xlu1 %v2794_v23, %s2996_s27 }
 0x419   : > { %1933 = vrot.lane.b32.xlu0 %v2800_v18, %s2996_s27 }
 0x41a   : > { %v2810_v27 = vpop.eup %2809 }
 0x41b   : > { %v2812_v43 = vpop.eup %2811 }
 0x41c   : > { %1939 = vrot.lane.b32.xlu1 %v2802_v9, %s2996_s27  ;;  %v1705_v9 = vld [vmem:[%s3176_s23 + $0x40] sm:$0xff] }
 0x41d   : > { %1937 = vrot.lane.b32.xlu0 %v2804_v34, %s2996_s27  ;;  %vm1721_vm15 = vcmp.gt.f32.partialorder %v1705_v9, 0.0 }
 0x41e   : > { %v2814_v57 = vpop.eup %2813 }
 0x41f   : > { %v2816_v47 = vpop.eup %2815 }
 0x420   : > { %1943 = vrot.lane.b32.xlu1 %v2806_v39, %s2996_s27 }
 0x421   : > { %1941 = vrot.lane.b32.xlu0 %v2808_v42, %s2996_s27 }
 0x424   : > { %1947 = vrot.lane.b32.xlu1 %v2810_v27, %s2996_s27 }
 0x425   : > { %1945 = vrot.lane.b32.xlu0 %v2812_v43, %s2996_s27 }
 0x428   : > { %1951 = vrot.lane.b32.xlu1 %v2814_v57, %s2996_s27 }
 0x429   : > { %1949 = vrot.lane.b32.xlu0 %v2816_v47, %s2996_s27  ;;  %v1708_v47 = vld [vmem:[%s3176_s23 + $0x58] sm:$0xff] }
 0x42a   : > { %vm1724_vm0 = vcmp.gt.f32.partialorder %v1708_v47, 0.0 }
 0x45e   : > { %v1748_v7 = vpop.permute.xlu1 %1747 }
 0x45f   : > { %v1794_v58 = vsel %vm1714_vm6, %v1748_v7, %v3588_v13  ;;  %v1746_v32 = vpop.permute.xlu0 %1745 }
 0x460   : > { %v2326_v1 = vmul.f32 -1.442695, %v1794_v58  ;;  %v1793_v59 = vsel %vm1713_vm7, %v1746_v32, %v3591_v19  ;;  %v1704_v19 = vld [vmem:[%s3176_s23 + $0x38] sm:$0xff]  ;;  %vm2049_vm7 = vcmask 277504  }
 0x461   : > { %v2325_v62 = vmul.f32 -1.442695, %v1793_v59  ;;  %vm1720_vm12 = vcmp.gt.f32.partialorder %v1704_v19, 0.0 }
 0x462   : > { %2817 = vpow2.f32 %v2326_v1  ;;  %v1752_v4 = vpop.permute.xlu1 %1751 }
 0x463   : > { %2819 = vpow2.f32 %v2325_v62  ;;  %v1796_v3 = vsel %vm1716_vm8, %v1752_v4, %v3600_v5  ;;  %v1750_v15 = vpop.permute.xlu0 %1749  ;;  %v1710_v62 = vld [vmem:[%s3176_s23 + $0x68] sm:$0xff]  ;;  %vm2066_vm8 = vcmask 285696  }
 0x464   : > { %v2328_v40 = vmul.f32 -1.442695, %v1796_v3  ;;  %v1795_v13 = vsel %vm1715_vm9, %v1750_v15, %v3603_v21  ;;  %v1706_v21 = vld [vmem:[%s3176_s23 + $0x48] sm:$0xff]  ;;  %vm1726_vm2 = vcmp.gt.f32.partialorder %v1710_v62, 0.0 }
 0x465   : > { %v2327_v23 = vmul.f32 -1.442695, %v1795_v13  ;;  %vm1722_vm14 = vcmp.gt.f32.partialorder %v1706_v21, 0.0 }
 0x466   : > { %2821 = vpow2.f32 %v2328_v40  ;;  %v1756_v10 = vpop.permute.xlu1 %1755 }
 0x467   : > { %2823 = vpow2.f32 %v2327_v23  ;;  %v1798_v8 = vsel %vm1718_vm10, %v1756_v10, %v3612_v22  ;;  %v1754_v28 = vpop.permute.xlu0 %1753  ;;  %v1712_v10 = vld [vmem:[%s3176_s23 + $0x78] sm:$0xff] }
 0x468   : > { %v2330_v18 = vmul.f32 -1.442695, %v1798_v8  ;;  %v1797_v5 = vsel %vm1717_vm11, %v1754_v28, %v3615_v33  ;;  %v1711_v28 = vld [vmem:[%s3176_s23 + $0x70] sm:$0xff]  ;;  %vm1728_vm5 = vcmp.gt.f32.partialorder %v1712_v10, 0.0 }
 0x469   : > { %v2329_v48 = vmul.f32 -1.442695, %v1797_v5  ;;  %vm1727_vm6 = vcmp.gt.f32.partialorder %v1711_v28, 0.0 }
 0x46a   : > { %2825 = vpow2.f32 %v2330_v18  ;;  %v1760_v31 = vpop.permute.xlu1 %1759 }
 0x46b   : > { %2827 = vpow2.f32 %v2329_v48  ;;  %v1800_v34 = vsel %vm1720_vm12, %v1760_v31, %v3624_v35  ;;  %v1758_v39 = vpop.permute.xlu0 %1757 }
 0x46c   : > { %v2818_v42 = vpop.eup %2817  ;;  %v2332_v27 = vmul.f32 -1.442695, %v1800_v34  ;;  %v1799_v22 = vsel %vm1719_vm13, %v1758_v39, %v3627_v41 }
 0x46d   : > { %v2820_v43 = vpop.eup %2819  ;;  %v1858_v33 = vadd.f32 1.0, %v2818_v42  ;;  %v2331_v57 = vmul.f32 -1.442695, %v1799_v22 }
 0x46e   : > { %v1857_v49 = vadd.f32 1.0, %v2820_v43  ;;  %2829 = vpow2.f32 %v2332_v27  ;;  %v1764_v50 = vpop.permute.xlu1 %1763 }
 0x46f   : > { %2831 = vrcp.f32 %v1858_v33  ;;  %v1802_v7 = vsel %vm1722_vm14, %v1764_v50, %v3635_v24  ;;  %v1762_v35 = vpop.permute.xlu0 %1761 }
 0x470   : > { %v2822_v0 = vpop.eup %2821  ;;  %2833 = vrcp.f32 %v1857_v49  ;;  %v2334_v58 = vmul.f32 -1.442695, %v1802_v7  ;;  %v1801_v41 = vsel %vm1721_vm15, %v1762_v35, %v3638_v51 }
 0x471   : > { %v2824_v32 = vpop.eup %2823  ;;  %v1860_v1 = vadd.f32 1.0, %v2822_v0  ;;  %2835 = vpow2.f32 %v2331_v57  ;;  %v2333_v59 = vmul.f32 -1.442695, %v1801_v41 }
 0x472   : > { %v1859_v2 = vadd.f32 1.0, %v2824_v32  ;;  %2837 = vpow2.f32 %v2334_v58  ;;  %v1768_v4 = vpop.permute.xlu1 %1767 }
 0x473   : > { %2839 = vrcp.f32 %v1860_v1  ;;  %v1804_v24 = vsel %vm1724_vm0, %v1768_v4, %v3647_v63  ;;  %v1766_v3 = vpop.permute.xlu0 %1765 }
 0x474   : > { %v2826_v15 = vpop.eup %2825  ;;  %2841 = vrcp.f32 %v1859_v2  ;;  %v2336_v51 = vmul.f32 -1.442695, %v1804_v24  ;;  %v1803_v40 = vsel %vm1723_vm1, %v1766_v3, %v3650_v37 }
 0x475   : > { %v2828_v13 = vpop.eup %2827  ;;  %v1862_v23 = vadd.f32 1.0, %v2826_v15  ;;  %2843 = vpow2.f32 %v2333_v59  ;;  %v2335_v19 = vmul.f32 -1.442695, %v1803_v40 }
 0x476   : > { %v1861_v20 = vadd.f32 1.0, %v2828_v13  ;;  %2845 = vpow2.f32 %v2336_v51  ;;  %v1772_v8 = vpop.permute.xlu1 %1771 }
 0x477   : > { %2847 = vrcp.f32 %v1862_v23  ;;  %v1806_v63 = vsel %vm1726_vm2, %v1772_v8, %v3659_v11  ;;  %v1770_v18 = vpop.permute.xlu0 %1769 }
 0x478   : > { %v2830_v5 = vpop.eup %2829  ;;  %2849 = vrcp.f32 %v1861_v20  ;;  %v2338_v48 = vmul.f32 -1.442695, %v1806_v63  ;;  %v1805_v37 = vsel %vm1725_vm3, %v1770_v18, %v3662_v45 }
 0x479   : > { %v2832_v21 = vpop.eup %2831  ;;  %v1864_v31 = vadd.f32 1.0, %v2830_v5  ;;  %2851 = vpow2.f32 %v2335_v19  ;;  %v2337_v9 = vmul.f32 -1.442695, %v1805_v37 }
 0x47a   : > { %v2834_v34 = vpop.eup %2833  ;;  %2853 = vpow2.f32 %v2338_v48  ;;  %1987 = vrot.lane.b32.xlu1 %v2832_v21, %s2997_s24  ;;  %v1776_v39 = vpop.permute.xlu1 %1775 }
 0x47b   : > { %v2836_v42 = vpop.eup %2835  ;;  %2855 = vrcp.f32 %v1864_v31  ;;  %v1808_v11 = vsel %vm1728_vm5, %v1776_v39, %v3671_v26  ;;  %1985 = vrot.lane.b32.xlu0 %v2834_v34, %s2997_s24  ;;  %v1774_v27 = vpop.permute.xlu0 %1773 }
 0x47c   : > { %v2838_v45 = vpop.eup %2837  ;;  %v1863_v22 = vadd.f32 1.0, %v2836_v42  ;;  %2857 = vpow2.f32 %v2337_v9  ;;  %v2340_v43 = vmul.f32 -1.442695, %v1808_v11  ;;  %v1807_v33 = vsel %vm1727_vm6, %v1774_v27, %v3674_v53 }
 0x47d   : > { %v2840_v57 = vpop.eup %2839  ;;  %v1866_v47 = vadd.f32 1.0, %v2838_v45  ;;  %v2339_v49 = vmul.f32 -1.442695, %v1807_v33 }
 0x47e   : > { %v2842_v50 = vpop.eup %2841  ;;  %2859 = vrcp.f32 %v1863_v22  ;;  %1991 = vrot.lane.b32.xlu1 %v2840_v57, %s2997_s24  ;;  %v1924_v28 = vpop.permute.xlu1 %1923 }
 0x47f   : > { %v2844_v56 = vpop.eup %2843  ;;  %2861 = vrcp.f32 %v1866_v47  ;;  %1989 = vrot.lane.b32.xlu0 %v2842_v50, %s2997_s24  ;;  %v1922_v63 = vpop.permute.xlu0 %1921 }
 0x480   : > { %v2846_v26 = vpop.eup %2845  ;;  %v1865_v7 = vadd.f32 1.0, %v2844_v56  ;;  %2863 = vpow2.f32 %v2340_v43  ;;  %v2034_v43 = vsel %vm1178_vm4, %v3421_v16, %v1924_v28  ;;  %v2033_v57 = vsel %vm1178_vm4, %v3414_v6, %v1922_v63 }
 0x481   : > { %v2848_v35 = vpop.eup %2847  ;;  %v1868_v0 = vadd.f32 1.0, %v2846_v26  ;;  %2865 = vpow2.f32 %v2339_v49 }
 0x482   : > { %v2850_v58 = vpop.eup %2849  ;;  %2867 = vrcp.f32 %v1865_v7  ;;  %1995 = vrot.lane.b32.xlu1 %v2848_v35, %s2997_s24  ;;  %v1928_v18 = vpop.permute.xlu1 %1927 }
 0x483   : > { %v2852_v53 = vpop.eup %2851  ;;  %2869 = vrcp.f32 %v1868_v0  ;;  %1993 = vrot.lane.b32.xlu0 %v2850_v58, %s2997_s24  ;;  %v1926_v5 = vpop.permute.xlu0 %1925  ;;  %v2036_v7 = vsel %vm1178_vm4, %v3433_v25, %v1928_v18 }
 0x484   : > { %v2854_v41 = vpop.eup %2853  ;;  %v1867_v32 = vadd.f32 1.0, %v2852_v53  ;;  %v2035_v6 = vsel %vm1178_vm4, %v3424_v17, %v1926_v5 }
 0x485   : > { %v2856_v1 = vpop.eup %2855  ;;  %v1870_v59 = vadd.f32 1.0, %v2854_v41 }
 0x486   : > { %v2858_v62 = vpop.eup %2857  ;;  %2871 = vrcp.f32 %v1867_v32  ;;  %1999 = vrot.lane.b32.xlu1 %v2856_v1, %s2997_s24  ;;  %v1932_v48 = vpop.permute.xlu1 %1931 }
 0x487   : > { %2873 = vrcp.f32 %v1870_v59  ;;  %v1869_v2 = vadd.f32 1.0, %v2858_v62  ;;  %v1930_v37 = vpop.permute.xlu0 %1929  ;;  %v2038_v25 = vsel %vm1178_vm4, %v3445_v29, %v1932_v48 }
 0x488   : > { %v2860_v4 = vpop.eup %2859  ;;  %v2037_v17 = vsel %vm1178_vm4, %v3436_v14, %v1930_v37 }
 0x489   : > { %v2862_v12 = vpop.eup %2861  ;;  %2875 = vrcp.f32 %v1869_v2  ;;  %1997 = vrot.lane.b32.xlu0 %v2860_v4, %s2997_s24 }
 0x48a   : > { %v2864_v24 = vpop.eup %2863  ;;  %2003 = vrot.lane.b32.xlu1 %v2862_v12, %s2997_s24  ;;  %v1936_v21 = vpop.permute.xlu1 %1935 }
 0x48b   : > { %v2866_v3 = vpop.eup %2865  ;;  %v1872_v15 = vadd.f32 1.0, %v2864_v24  ;;  %v1934_v31 = vpop.permute.xlu0 %1933  ;;  %v2040_v29 = vsel %vm1178_vm4, %v3457_v36, %v1936_v21 }
 0x48c   : > { %v2868_v51 = vpop.eup %2867  ;;  %v1871_v40 = vadd.f32 1.0, %v2866_v3  ;;  %v2039_v3 = vsel %vm1178_vm4, %v3448_v30, %v1934_v31 }
 0x48d   : > { %v2870_v13 = vpop.eup %2869  ;;  %2877 = vrcp.f32 %v1872_v15  ;;  %2001 = vrot.lane.b32.xlu0 %v2868_v51, %s2997_s24 }
 0x48e   : > { %2879 = vrcp.f32 %v1871_v40  ;;  %2007 = vrot.lane.b32.xlu1 %v2870_v13, %s2997_s24  ;;  %v1940_v9 = vpop.permute.xlu1 %1939 }
 0x48f   : > { %v1938_v34 = vpop.permute.xlu0 %1937  ;;  %v2042_v51 = vsel %vm1178_vm4, %v3469_v44, %v1940_v9 }
 0x490   : > { %v2872_v23 = vpop.eup %2871  ;;  %v2041_v30 = vsel %vm1178_vm4, %v3460_v38, %v1938_v34 }
 0x491   : > { %v2874_v19 = vpop.eup %2873  ;;  %2005 = vrot.lane.b32.xlu0 %v2872_v23, %s2997_s24 }
 0x492   : > { %2011 = vrot.lane.b32.xlu1 %v2874_v19, %s2997_s24  ;;  %v1944_v39 = vpop.permute.xlu1 %1943 }
 0x493   : > { %v2876_v10 = vpop.eup %2875  ;;  %v1942_v42 = vpop.permute.xlu0 %1941  ;;  %v2044_v44 = vsel %vm1178_vm4, %v3482_v52, %v1944_v39 }
 0x494   : > { %v2043_v38 = vsel %vm1178_vm4, %v3472_v46, %v1942_v42 }
 0x495   : > { %2009 = vrot.lane.b32.xlu0 %v2876_v10, %s2997_s24 }
 0x496   : > { %v3746_v11 = vpop.permute.xlu1 %1947 }
 0x497   : > { %v2878_v20 = vpop.eup %2877  ;;  %v3748_v27 = vpop.permute.xlu0 %1945  ;;  %v2046_v52 = vsel %vm1178_vm4, %v3494_v60, %v3746_v11 }
 0x498   : > { %v2880_v8 = vpop.eup %2879  ;;  %2015 = vrot.lane.b32.xlu1 %v2878_v20, %s2997_s24  ;;  %v2045_v46 = vsel %vm1178_vm4, %v3485_v54, %v3748_v27 }
 0x499   : > { %2013 = vrot.lane.b32.xlu0 %v2880_v8, %s2997_s24 }
 0x49a   : > { %v3750_v45 = vpop.permute.xlu1 %1951 }
 0x49b   : > { %v3752_v22 = vpop.permute.xlu0 %1949  ;;  %v2048_v42 = vsel %vm1178_vm4, %v3504_v55, %v3750_v45 }
 0x4ec   : > { %v1988_v33 = vpop.permute.xlu1 %1987 }
 0x4ed   : > { %v2051_v47 = vsel %vm2049_vm7, %v2034_v43, %v1988_v33  ;;  %v1986_v49 = vpop.permute.xlu0 %1985  ;;  %v2047_v43 = vsel %vm1178_vm4, %v3497_v61, %v3752_v22 }
 0x4ee   : > { %v2068_v50 = vsel %vm2066_vm8, %v2051_v47, 0.0  ;;  %v2050_v56 = vsel %vm2049_vm7, %v2033_v57, %v1986_v49 }
 0x4ef   : > { %2084 = vst [vmem:[%s3180_s9 + $0x8] sm:$0xff] %v2068_v50  ;;  %v2067_v26 = vsel %vm2066_vm8, %v2050_v56, 0.0 }
 0x4f0   : > { %2083 = vst [vmem:[%s3180_s9] sm:$0xff] %v2067_v26  ;;  %v1992_v16 = vpop.permute.xlu1 %1991 }
 0x4f1   : > { %v2053_v35 = vsel %vm2049_vm7, %v2036_v7, %v1992_v16  ;;  %v1990_v0 = vpop.permute.xlu0 %1989 }
 0x4f2   : > { %v2070_v58 = vsel %vm2066_vm8, %v2053_v35, 0.0  ;;  %v2052_v53 = vsel %vm2049_vm7, %v2035_v6, %v1990_v0 }
 0x4f3   : > { %2086 = vst [vmem:[%s3180_s9 + $0x18] sm:$0xff] %v2070_v58  ;;  %v2069_v41 = vsel %vm2066_vm8, %v2052_v53, 0.0 }
 0x4f4   : > { %2085 = vst [vmem:[%s3180_s9 + $0x10] sm:$0xff] %v2069_v41  ;;  %v1996_v32 = vpop.permute.xlu1 %1995 }
 0x4f5   : > { %v2055_v1 = vsel %vm2049_vm7, %v2038_v25, %v1996_v32  ;;  %v1994_v59 = vpop.permute.xlu0 %1993 }
 0x4f6   : > { %v2072_v62 = vsel %vm2066_vm8, %v2055_v1, 0.0  ;;  %v2054_v2 = vsel %vm2049_vm7, %v2037_v17, %v1994_v59 }
 0x4f7   : > { %2088 = vst [vmem:[%s3180_s9 + $0x28] sm:$0xff] %v2072_v62  ;;  %v2071_v4 = vsel %vm2066_vm8, %v2054_v2, 0.0 }
 0x4f8   : > { %2087 = vst [vmem:[%s3180_s9 + $0x20] sm:$0xff] %v2071_v4  ;;  %v2000_v12 = vpop.permute.xlu1 %1999 }
 0x4f9   : > { %v2057_v24 = vsel %vm2049_vm7, %v2040_v29, %v2000_v12 }
 0x4fa   : > { %v2074_v14 = vsel %vm2066_vm8, %v2057_v24, 0.0 }
 0x4fb   : > { %2090 = vst [vmem:[%s3180_s9 + $0x38] sm:$0xff] %v2074_v14  ;;  %v1998_v15 = vpop.permute.xlu0 %1997 }
 0x4fc   : > { %v2056_v40 = vsel %vm2049_vm7, %v2039_v3, %v1998_v15  ;;  %v2004_v13 = vpop.permute.xlu1 %2003 }
 0x4fd   : > { %v2073_v36 = vsel %vm2066_vm8, %v2056_v40, 0.0  ;;  %v2059_v23 = vsel %vm2049_vm7, %v2042_v51, %v2004_v13 }
 0x4fe   : > { %2089 = vst [vmem:[%s3180_s9 + $0x30] sm:$0xff] %v2073_v36  ;;  %v2076_v19 = vsel %vm2066_vm8, %v2059_v23, 0.0 }
 0x4ff   : > { %2092 = vst [vmem:[%s3180_s9 + $0x48] sm:$0xff] %v2076_v19  ;;  %v2002_v10 = vpop.permute.xlu0 %2001 }
 0x500   : > { %v2058_v20 = vsel %vm2049_vm7, %v2041_v30, %v2002_v10  ;;  %v2008_v8 = vpop.permute.xlu1 %2007 }
 0x501   : > { %v2075_v28 = vsel %vm2066_vm8, %v2058_v20, 0.0  ;;  %v2061_v63 = vsel %vm2049_vm7, %v2044_v44, %v2008_v8 }
 0x502   : > { %2091 = vst [vmem:[%s3180_s9 + $0x40] sm:$0xff] %v2075_v28  ;;  %v2078_v18 = vsel %vm2066_vm8, %v2061_v63, 0.0 }
 0x503   : > { %2094 = vst [vmem:[%s3180_s9 + $0x58] sm:$0xff] %v2078_v18  ;;  %v2006_v5 = vpop.permute.xlu0 %2005 }
 0x504   : > { %v2060_v48 = vsel %vm2049_vm7, %v2043_v38, %v2006_v5  ;;  %v2012_v37 = vpop.permute.xlu1 %2011 }
 0x505   : > { %v2077_v21 = vsel %vm2066_vm8, %v2060_v48, 0.0  ;;  %v2063_v31 = vsel %vm2049_vm7, %v2046_v52, %v2012_v37 }
 0x506   : > { %2093 = vst [vmem:[%s3180_s9 + $0x50] sm:$0xff] %v2077_v21  ;;  %v2080_v9 = vsel %vm2066_vm8, %v2063_v31, 0.0 }
 0x507   : > { %2096 = vst [vmem:[%s3180_s9 + $0x68] sm:$0xff] %v2080_v9  ;;  %v2010_v34 = vpop.permute.xlu0 %2009 }
 0x508   : > { %v2062_v60 = vsel %vm2049_vm7, %v2045_v46, %v2010_v34 }
 0x509   : > { %v2079_v39 = vsel %vm2066_vm8, %v2062_v60, 0.0 }
 0x50a   : > { %2095 = vst [vmem:[%s3180_s9 + $0x60] sm:$0xff] %v2079_v39  ;;  %v2016_v11 = vpop.permute.xlu1 %2015 }
 0x50b   : > { %v2065_v33 = vsel %vm2049_vm7, %v2048_v42, %v2016_v11  ;;  %v2014_v57 = vpop.permute.xlu0 %2013 }
 0x50c   : > { %v2082_v54 = vsel %vm2066_vm8, %v2065_v33, 0.0  ;;  %v2064_v27 = vsel %vm2049_vm7, %v2047_v43, %v2014_v57 }
 0x50d   : > { %2098 = vst [vmem:[%s3180_s9 + $0x78] sm:$0xff] %v2082_v54  ;;  %v2081_v47 = vsel %vm2066_vm8, %v2064_v27, 0.0 }
 0x50e   : > { %2097 = vst [vmem:[%s3180_s9 + $0x70] sm:$0xff] %v2081_v47 }
 0x50f PF: > { %s2346_s23 = sshll.u32 %s2979_s19, 11  ;;  %s3944_s0 = sld [smem:[#allocation18_spill]] }
 0x510   : > { %s2113_s20 = sshll.u32 %s3180_s9, 4  ;;  %s3945_s21 = sand.u32 1, %s2959_s14   ;;  %s3845_s20 = int_to_ptr.vmem [resolvable:$true] %s2113_s20 }
 0x511   : > { %s3849_s18 = scalar_lea.sflag [#allocation5], %s3945_s21  ;;  %s2881_s13 = scalar_lea.vmem %s3845_s20, 2048 }
 0x512   : > { %p2882_p8 = scmp.ne.s32.totalorder %s3845_s20, %s2881_s13  ;;  %s2998_s19 = smov [#allocation4]  }
 0x513   : > { %s2885_s26 = sshll.u32 %s2998_s19, 4  ;;  %s2886_s26 = int_to_ptr.vmem [resolvable:$false] %s2885_s26 }
 0x514   : > { %p2883_p9 = pnand %p2882_p8, %p3128_p7  ;;  %s2887_s29 = scalar_lea.vmem %s2886_s26, 4096 }
 0x515   : > { %s3842_s17 = scalar_lea.hbm %s3944_s0, %s2346_s23  ;;  %p2888_p11 = scmp.lt.s32.totalorder %s3845_s20, %s2886_s26 }
 0x516   : > { %p2884_p10 = pneg %p2883_p9  ;;  %p2889_p13 = scmp.lt.s32.totalorder %s2887_s29, %s2881_s13 }
 0x518   : > { %p2890_p0 = por %p2889_p13, %p2888_p11 }
 0x51a   : > { %p2891_p1 = pnand %p2890_p0, %p2884_p10 }
 0x51c   : > { %2894 = shalt.err (!%p2891_p1)
}
 0x51d   : > { %s2895_s9 = scalar_lea.hbm %s3842_s17, 2048  ;;  %s2899_s12 = scalar_lea.hbm %s3944_s0, 6144 }
 0x51e   : > { %p2896_p2 = scmp.ne.s32.totalorder %s3842_s17, %s2895_s9  ;;  %p2900_p5 = scmp.lt.u32.totalorder %s3842_s17, %s3944_s0 }
 0x51f   : > { %p2901_p6 = scmp.lt.u32.totalorder %s2899_s12, %s2895_s9  ;;  %p2903_p9 = scmp.lt.u32.totalorder %s2895_s9, %s3842_s17 }
 0x520   : > { %p2897_p3 = pnand %p2896_p2, %p3128_p7 }
 0x521   : > { %p2902_p8 = por %p2901_p6, %p2900_p5 }
 0x522   : > { %p2898_p4 = pneg %p2897_p3 }
 0x523   : > { %p2904_p10 = por %p2903_p9, %p2902_p8 }
 0x525   : > { %p2905_p11 = pnand %p2904_p10, %p2898_p4 }
 0x527   : > { %2908 = shalt.err (!%p2905_p11)
}
 0x528   : > { %s2999_s24 = smov 128   ;;  %s3000_s23 = smov 8  }
 0x529   : > { %2619 = dma.vmem_to_hbm [thread:$0]  (%p3128_p7), %s3845_s20, 2048, %s3842_s17, %s3849_s18, %s2999_s24, %s2999_s24, %s3000_s23  }
 0x52a PF: > { %s3946_s16 = sld [smem:[#allocation7_spill]]  ;;  %p2625_p13 = scmp.ge.s32.totalorder %s2991_s22, 2 }
 0x52c   : > { %p2622_p0 = pnand %p2625_p13, %p3136_p12 }
 0x530   : > { %s2128_s21 = sand.u32 1, %s3946_s16  }
 0x531   : > { %s2129_s13 = scalar_lea.sflag [#allocation5], %s2128_s21 }
 0x532   : > { %2950 = dma.done.wait (!%p2622_p0), %s2129_s13, 2048  }
 0x533   : > { %2952 = vsyncadd (!%p2622_p0), %s2129_s13, 4294965248  ;;  %s23_s22 = sadd.s32 1, %s2991_s22   ;;  %s3948_s19 = sld [smem:[#allocation14_spill]] }
 0x534   : > { %p20_p1 = scmp.ge.s32.totalorder %s23_s22, 11   ;;  %s3949_s16 = sld [smem:[#allocation8_spill]] }
 0x535   : > { %s3950_s17 = sld [smem:[#allocation15_spill]]  ;;  %s3951_s18 = sld [smem:[#allocation9_spill]] }
 0x536   : > { %s3952_s11 = sld [smem:[#allocation10_spill]]  ;;  %s3953_s20 = sld [smem:[#allocation11_spill]] }
 0x537   : > { %s3954_s21 = sld [smem:[#allocation12_spill]]  ;;  %s3955_s13 = smov %s2959_s14 }
 0x538   : > { %s3956_s14 = smov %s2963_s15  ;;  %22 = sbr.rel (!%p20_p1) target bundleno = 10 (0xa), region = 155 }
 0x539   : > { %s3957_s15 = smov %s3948_s19 }
 0x53c   : > { %s3958_s19 = smov %s3952_s11 }
 0x53f   :  { %2134 = vsyncpa [#allocation5], 1 }
 0x540   :  { %2136 = vsyncpa [#allocation5 + $0x1], 1 }

</bundles_post_ra>
